<compile_context>
chip_gen: v5e
topology: v5e:2x2
jax: 0.10.0
libtpu: 0.0.40
codegen_flags: <defaults>
</compile_context>

<pallas_src>
import functools

import jax
import jax.numpy as jnp
from jax import lax
from jax.experimental import pallas as pl
from jax.experimental.pallas import tpu as pltpu


def _sigmoid_via_tanh(x):
    # sigmoid(x) == 0.5 * tanh(0.5 * x) + 0.5 exactly; single EUP push, muls/adds ride the
    # VPU slot (off the EUP critical path).
    return 0.5 * jnp.tanh(0.5 * x) + 0.5


def lstm_last_linear_kernel(x_ref,      # (T*B, I)     time-major, batch-padded inputs
                            w_ih_ref,   # (I, 4*Hp)    gate-block-padded weight_ih_l0.T
                            w_hh_ref,   # (Hp, 4*Hp)   gate-block-padded weight_hh_l0.T
                            b_ref,      # (1, 4*Hp)    gate-block-padded (b_ih + b_hh)
                            w_out_ref,  # (Hp, O_pad)  output_layer.weight.T (zero padded)
                            b_out_ref,  # (1, O_pad)
                            out_ref,    # (B, O_pad)
                            gx_ref,     # VMEM scratch (T*B, 4*Hp): hoisted input projection
                            *, seq_len):
    TB, I = x_ref.shape
    B = TB // seq_len
    Hp = w_hh_ref.shape[0]

    # Hoisted input projection + bias for every timestep, off the serial recurrence chain.
    if I == 1:
        # True scalar input: broadcast FMA on the VPU instead of a degenerate MXU matmul.
        gx_ref[...] = x_ref[...] * w_ih_ref[...] + b_ref[...]
    else:
        gx_ref[...] = (jnp.dot(x_ref[...], w_ih_ref[...],
                               preferred_element_type=jnp.float32) + b_ref[...])

    w_hh = w_hh_ref[...]                                  # recurrent weight stays resident

    def step(t, carry):
        h, c = carry
        off = pl.multiple_of(t * B, 8)                    # B is a multiple of 8
        gates = gx_ref[pl.ds(off, B), :] + jnp.dot(
            h, w_hh, preferred_element_type=jnp.float32)  # (B, 4*Hp)
        # Gate blocks are 128-lane (vreg) aligned -> slices are free views, no XLU rotates.
        # Padded lanes of `gates` are exactly 0 (zero weight cols + zero bias), so padded
        # c lanes stay 0 (0.5*0 + 0.5*tanh(0)) and padded h lanes stay 0 (0.5*tanh(0)).
        i_g = _sigmoid_via_tanh(gates[:, 0 * Hp:1 * Hp])
        f_g = _sigmoid_via_tanh(gates[:, 1 * Hp:2 * Hp])
        g_g = jnp.tanh(gates[:, 2 * Hp:3 * Hp])
        o_g = _sigmoid_via_tanh(gates[:, 3 * Hp:4 * Hp])
        c_new = f_g * c + i_g * g_g
        h_new = o_g * jnp.tanh(c_new)
        return (h_new, c_new)

    h0 = jnp.zeros((B, Hp), dtype=jnp.float32)
    c0 = jnp.zeros((B, Hp), dtype=jnp.float32)
    # Bounded unroll: full for tiny static T, capped so vreg pressure stays bounded as T grows.
    h_last, _ = lax.fori_loop(0, seq_len, step, (h0, c0), unroll=min(seq_len, 8))

    # Linear head; O padded to 128 lanes -> unmasked lane-dense store.
    out_ref[...] = (jnp.dot(h_last, w_out_ref[...],
                            preferred_element_type=jnp.float32) + b_out_ref[...])


def _pad_gate_axis(a, H, H_pad, axis):
    """Zero-pad each of the 4 PyTorch LSTM gate blocks (i, f, g, o) from H to H_pad."""
    if H_pad == H:
        return a
    parts = jnp.split(a, 4, axis=axis)
    pad_width = [(0, 0)] * a.ndim
    pad_width[axis] = (0, H_pad - H)
    return jnp.concatenate([jnp.pad(p, pad_width) for p in parts], axis=axis)


def predict_simple_formula_net(x, params):
    """x: (B, T, I) batch_first inputs (matches the PyTorch module)."""
    w_ih, w_hh, b_ih, b_hh, w_out, b_out = params
    B, T, I = x.shape
    H = w_hh.shape[0]          # w_hh is stored transposed as (H, 4H)
    O = w_out.shape[1]

    # Hardware tiles: batch -> 8 sublanes, each gate block -> 128 lanes, output -> 128 lanes.
    B_pad = max(8, ((B + 7) // 8) * 8)
    H_pad = max(128, ((H + 127) // 128) * 128)
    O_pad = max(128, ((O + 127) // 128) * 128)
    I_in = I if I == 1 else ((I + 7) // 8) * 8           # only pad K when the MXU path is used

    # Time-major + batch pad; under jit these layout ops fuse with the pallas_call's inputs.
    x_tbi = jnp.transpose(x, (1, 0, 2)).astype(jnp.float32)                 # (T, B, I)
    x_tbi = jnp.pad(x_tbi, ((0, 0), (0, B_pad - B), (0, I_in - I)))
    x2d = x_tbi.reshape(T * B_pad, I_in)

    w_ih_p = _pad_gate_axis(w_ih.astype(jnp.float32), H, H_pad, axis=1)     # (I, 4*Hp)
    w_ih_p = jnp.pad(w_ih_p, ((0, I_in - I), (0, 0)))                       # (I_in, 4*Hp)
    w_hh_p = _pad_gate_axis(w_hh.astype(jnp.float32), H, H_pad, axis=1)     # (H, 4*Hp)
    w_hh_p = jnp.pad(w_hh_p, ((0, H_pad - H), (0, 0)))                      # (Hp, 4*Hp)
    b_comb = _pad_gate_axis((b_ih + b_hh).astype(jnp.float32),
                            H, H_pad, axis=0).reshape(1, 4 * H_pad)         # (1, 4*Hp)
    w_out_p = jnp.pad(w_out.astype(jnp.float32),
                      ((0, H_pad - H), (0, O_pad - O)))                     # (Hp, O_pad)
    b_out_p = jnp.pad(b_out.astype(jnp.float32),
                      ((0, O_pad - O),)).reshape(1, O_pad)                  # (1, O_pad)

    vmem = pl.BlockSpec(memory_space=pltpu.MemorySpace.VMEM)
    kernel = functools.partial(lstm_last_linear_kernel, seq_len=T)
    out_pad = pl.pallas_call(
        kernel,
        out_shape=jax.ShapeDtypeStruct((B_pad, O_pad), jnp.float32),
        in_specs=[vmem] * 6,
        out_specs=vmem,
        scratch_shapes=[pltpu.VMEM((T * B_pad, 4 * H_pad), jnp.float32)],
    )(x2d, w_ih_p, w_hh_p, b_comb, w_out_p, b_out_p)
    # Padded batch rows see the bias and evolve nonzero state, but are sliced off here.
    return out_pad[:B, :O]


predict_simple_formula_net_jit = jax.jit(predict_simple_formula_net)


def lstm_linear_reference(x, params):
    """Pure-JAX reference mirroring the PyTorch forward (for correctness checking)."""
    w_ih, w_hh, b_ih, b_hh, w_out, b_out = params
    B, T, I = x.shape
    H = w_hh.shape[0]
    h = jnp.zeros((B, H), jnp.float32)
    c = jnp.zeros((B, H), jnp.float32)
    for t in range(T):
        gates = x[:, t, :] @ w_ih + h @ w_hh + b_ih + b_hh
        i_g = jax.nn.sigmoid(gates[:, 0 * H:1 * H])
        f_g = jax.nn.sigmoid(gates[:, 1 * H:2 * H])
        g_g = jnp.tanh(gates[:, 2 * H:3 * H])
        o_g = jax.nn.sigmoid(gates[:, 3 * H:4 * H])
        c = f_g * c + i_g * g_g
        h = o_g * jnp.tanh(c)
    return h @ w_out + b_out


def init_params(key, input_size, output_size, hidden_size):
    """Deterministic parameter init mirroring the module's __init__ shapes.

    weight_ih_l0: xavier_normal_  -> stored transposed as (I, 4H)
    weight_hh_l0: orthogonal_     -> stored transposed as (H, 4H)
    biases:       uniform(-1/sqrt(H), 1/sqrt(H)) (PyTorch LSTM default)
    output layer: uniform(-1/sqrt(H), 1/sqrt(H)) (PyTorch Linear default-ish)
    """
    I, O, H = input_size, output_size, hidden_size
    k1, k2, k3, k4, k5, k6 = jax.random.split(key, 6)

    std_ih = (2.0 / (I + 4 * H)) ** 0.5
    w_ih = (jax.random.normal(k1, (4 * H, I), jnp.float32) * std_ih).T      # (I, 4H)

    a = jax.random.normal(k2, (4 * H, H), jnp.float32)
    q, r = jnp.linalg.qr(a)
    q = q * jnp.sign(jnp.diag(r))[None, :]
    w_hh = q.T.astype(jnp.float32)                                          # (H, 4H)

    bound = 1.0 / (H ** 0.5)
    b_ih = jax.random.uniform(k3, (4 * H,), jnp.float32, -bound, bound)
    b_hh = jax.random.uniform(k4, (4 * H,), jnp.float32, -bound, bound)

    w_out = jax.random.uniform(k5, (H, O), jnp.float32, -bound, bound)      # Linear.weight.T
    b_out = jax.random.uniform(k6, (O,), jnp.float32, -bound, bound)

    return (w_ih, w_hh, b_ih, b_hh, w_out, b_out)


if __name__ == "__main__":
    # Small shapes consistent with the module: scalar time-series -> scalar prediction.
    B, T, I, H, O = 2, 8, 1, 32, 1

    key = jax.random.PRNGKey(0)
    kx, kp = jax.random.split(key)
    x = jax.random.normal(kx, (B, T, I), jnp.float32)   # (batch, seq, input_size)
    params = init_params(kp, I, O, H)

    out = predict_simple_formula_net_jit(x, params)
    jax.block_until_ready(out)
    assert out.shape == (B, O) and out.dtype == jnp.float32

    ref = lstm_linear_reference(x, params)
    assert jnp.allclose(out, ref, atol=1e-4, rtol=1e-4), (out, ref)
    print("KERNEL_OK")
</pallas_src>

<mosaic_0001>
module attributes {stable_mosaic.version = 11 : i64} {
  func.func @lstm_last_linear_kernel(%arg0: memref<64x1xf32, #tpu.memory_space<vmem>>, %arg1: memref<1x512xf32, #tpu.memory_space<vmem>>, %arg2: memref<128x512xf32, #tpu.memory_space<vmem>>, %arg3: memref<1x512xf32, #tpu.memory_space<vmem>>, %arg4: memref<128x128xf32, #tpu.memory_space<vmem>>, %arg5: memref<1x128xf32, #tpu.memory_space<vmem>>, %arg6: memref<8x128xf32, #tpu.memory_space<vmem>>, %arg7: memref<64x512xf32, #tpu.memory_space<vmem>>) attributes {dimension_semantics = [], scalar_prefetch = 0 : i64, scratch_operands = 1 : i64, tpu.core_type = #tpu.core_type<tc>} {
    %c0 = arith.constant 0 : index
    %c0_0 = arith.constant 0 : index
    %0 = vector.load %arg0[%c0, %c0_0] : memref<64x1xf32, #tpu.memory_space<vmem>>, vector<64x1xf32>
    %c0_1 = arith.constant 0 : index
    %c0_2 = arith.constant 0 : index
    %1 = vector.load %arg1[%c0_1, %c0_2] : memref<1x512xf32, #tpu.memory_space<vmem>>, vector<1x512xf32>
    %2 = vector.broadcast %0 : vector<64x1xf32> to vector<64x512xf32>
    %3 = vector.broadcast %1 : vector<1x512xf32> to vector<64x512xf32>
    %4 = arith.mulf %2, %3 : vector<64x512xf32>
    %c0_3 = arith.constant 0 : index
    %c0_4 = arith.constant 0 : index
    %5 = vector.load %arg3[%c0_3, %c0_4] : memref<1x512xf32, #tpu.memory_space<vmem>>, vector<1x512xf32>
    %6 = vector.broadcast %5 : vector<1x512xf32> to vector<64x512xf32>
    %7 = arith.addf %4, %6 : vector<64x512xf32>
    %c0_5 = arith.constant 0 : index
    %c0_6 = arith.constant 0 : index
    %8 = vector.load %arg7[%c0_5, %c0_6] : memref<64x512xf32, #tpu.memory_space<vmem>>, vector<64x512xf32>
    tpu.vector_store %arg7[%c0_5, %c0_6], %7 {strides = array<i32>} : memref<64x512xf32, #tpu.memory_space<vmem>>, vector<64x512xf32>,
    %c0_7 = arith.constant 0 : index
    %c0_8 = arith.constant 0 : index
    %9 = vector.load %arg2[%c0_7, %c0_8] : memref<128x512xf32, #tpu.memory_space<vmem>>, vector<128x512xf32>
    %cst = arith.constant 0.000000e+00 : f32
    %10 = vector.broadcast %cst : f32 to vector<8x128xf32>
    %cst_9 = arith.constant 0.000000e+00 : f32
    %11 = vector.broadcast %cst_9 : f32 to vector<8x128xf32>
    %c0_i32 = arith.constant 0 : i32
    %c8_i32 = arith.constant 8 : i32
    %12 = arith.muli %c0_i32, %c8_i32 : i32
    %13 = tpu.assume_multiple %12, 8 : i32
    %14 = arith.index_cast %13 : i32 to index
    %c0_10 = arith.constant 0 : index
    %15 = vector.load %arg7[%14, %c0_10] : memref<64x512xf32, #tpu.memory_space<vmem>>, vector<8x512xf32>
    %cst_11 = arith.constant dense<0.000000e+00> : vector<8x512xf32>
    %16 = tpu.matmul %10, %9, %cst_11 {dimension_numbers = #tpu.dot_dimension_numbers<[1], [0], [0], [1], [0, 0, 1, 1], [], []>} : vector<8x128xf32>, vector<128x512xf32>, vector<8x512xf32> -> vector<8x512xf32>
    %17 = arith.addf %15, %16 : vector<8x512xf32>
    %18 = vector.extract_strided_slice %17 {offsets = [0, 0], sizes = [8, 128], strides = [1, 1]} : vector<8x512xf32> to vector<8x128xf32>
    %cst_12 = arith.constant 5.000000e-01 : f32
    %19 = vector.broadcast %cst_12 : f32 to vector<8x128xf32>
    %20 = arith.mulf %19, %18 : vector<8x128xf32>
    %21 = math.tanh %20 : vector<8x128xf32>
    %cst_13 = arith.constant 5.000000e-01 : f32
    %22 = vector.broadcast %cst_13 : f32 to vector<8x128xf32>
    %23 = arith.mulf %22, %21 : vector<8x128xf32>
    %cst_14 = arith.constant 5.000000e-01 : f32
    %24 = vector.broadcast %cst_14 : f32 to vector<8x128xf32>
    %25 = arith.addf %23, %24 : vector<8x128xf32>
    %26 = vector.extract_strided_slice %17 {offsets = [0, 128], sizes = [8, 128], strides = [1, 1]} : vector<8x512xf32> to vector<8x128xf32>
    %cst_15 = arith.constant 5.000000e-01 : f32
    %27 = vector.broadcast %cst_15 : f32 to vector<8x128xf32>
    %28 = arith.mulf %27, %26 : vector<8x128xf32>
    %29 = math.tanh %28 : vector<8x128xf32>
    %cst_16 = arith.constant 5.000000e-01 : f32
    %30 = vector.broadcast %cst_16 : f32 to vector<8x128xf32>
    %31 = arith.mulf %30, %29 : vector<8x128xf32>
    %cst_17 = arith.constant 5.000000e-01 : f32
    %32 = vector.broadcast %cst_17 : f32 to vector<8x128xf32>
    %33 = arith.addf %31, %32 : vector<8x128xf32>
    %34 = vector.extract_strided_slice %17 {offsets = [0, 256], sizes = [8, 128], strides = [1, 1]} : vector<8x512xf32> to vector<8x128xf32>
    %35 = math.tanh %34 : vector<8x128xf32>
    %36 = vector.extract_strided_slice %17 {offsets = [0, 384], sizes = [8, 128], strides = [1, 1]} : vector<8x512xf32> to vector<8x128xf32>
    %cst_18 = arith.constant 5.000000e-01 : f32
    %37 = vector.broadcast %cst_18 : f32 to vector<8x128xf32>
    %38 = arith.mulf %37, %36 : vector<8x128xf32>
    %39 = math.tanh %38 : vector<8x128xf32>
    %cst_19 = arith.constant 5.000000e-01 : f32
    %40 = vector.broadcast %cst_19 : f32 to vector<8x128xf32>
    %41 = arith.mulf %40, %39 : vector<8x128xf32>
    %cst_20 = arith.constant 5.000000e-01 : f32
    %42 = vector.broadcast %cst_20 : f32 to vector<8x128xf32>
    %43 = arith.addf %41, %42 : vector<8x128xf32>
    %44 = arith.mulf %33, %11 : vector<8x128xf32>
    %45 = arith.mulf %25, %35 : vector<8x128xf32>
    %46 = arith.addf %44, %45 : vector<8x128xf32>
    %47 = math.tanh %46 : vector<8x128xf32>
    %48 = arith.mulf %43, %47 : vector<8x128xf32>
    %c1_i32 = arith.constant 1 : i32
    %c8_i32_21 = arith.constant 8 : i32
    %49 = arith.muli %c1_i32, %c8_i32_21 : i32
    %50 = tpu.assume_multiple %49, 8 : i32
    %51 = arith.index_cast %50 : i32 to index
    %c0_22 = arith.constant 0 : index
    %52 = vector.load %arg7[%51, %c0_22] : memref<64x512xf32, #tpu.memory_space<vmem>>, vector<8x512xf32>
    %cst_23 = arith.constant dense<0.000000e+00> : vector<8x512xf32>
    %53 = tpu.matmul %48, %9, %cst_23 {dimension_numbers = #tpu.dot_dimension_numbers<[1], [0], [0], [1], [0, 0, 1, 1], [], []>} : vector<8x128xf32>, vector<128x512xf32>, vector<8x512xf32> -> vector<8x512xf32>
    %54 = arith.addf %52, %53 : vector<8x512xf32>
    %55 = vector.extract_strided_slice %54 {offsets = [0, 0], sizes = [8, 128], strides = [1, 1]} : vector<8x512xf32> to vector<8x128xf32>
    %cst_24 = arith.constant 5.000000e-01 : f32
    %56 = vector.broadcast %cst_24 : f32 to vector<8x128xf32>
    %57 = arith.mulf %56, %55 : vector<8x128xf32>
    %58 = math.tanh %57 : vector<8x128xf32>
    %cst_25 = arith.constant 5.000000e-01 : f32
    %59 = vector.broadcast %cst_25 : f32 to vector<8x128xf32>
    %60 = arith.mulf %59, %58 : vector<8x128xf32>
    %cst_26 = arith.constant 5.000000e-01 : f32
    %61 = vector.broadcast %cst_26 : f32 to vector<8x128xf32>
    %62 = arith.addf %60, %61 : vector<8x128xf32>
    %63 = vector.extract_strided_slice %54 {offsets = [0, 128], sizes = [8, 128], strides = [1, 1]} : vector<8x512xf32> to vector<8x128xf32>
    %cst_27 = arith.constant 5.000000e-01 : f32
    %64 = vector.broadcast %cst_27 : f32 to vector<8x128xf32>
    %65 = arith.mulf %64, %63 : vector<8x128xf32>
    %66 = math.tanh %65 : vector<8x128xf32>
    %cst_28 = arith.constant 5.000000e-01 : f32
    %67 = vector.broadcast %cst_28 : f32 to vector<8x128xf32>
    %68 = arith.mulf %67, %66 : vector<8x128xf32>
    %cst_29 = arith.constant 5.000000e-01 : f32
    %69 = vector.broadcast %cst_29 : f32 to vector<8x128xf32>
    %70 = arith.addf %68, %69 : vector<8x128xf32>
    %71 = vector.extract_strided_slice %54 {offsets = [0, 256], sizes = [8, 128], strides = [1, 1]} : vector<8x512xf32> to vector<8x128xf32>
    %72 = math.tanh %71 : vector<8x128xf32>
    %73 = vector.extract_strided_slice %54 {offsets = [0, 384], sizes = [8, 128], strides = [1, 1]} : vector<8x512xf32> to vector<8x128xf32>
    %cst_30 = arith.constant 5.000000e-01 : f32
    %74 = vector.broadcast %cst_30 : f32 to vector<8x128xf32>
    %75 = arith.mulf %74, %73 : vector<8x128xf32>
    %76 = math.tanh %75 : vector<8x128xf32>
    %cst_31 = arith.constant 5.000000e-01 : f32
    %77 = vector.broadcast %cst_31 : f32 to vector<8x128xf32>
    %78 = arith.mulf %77, %76 : vector<8x128xf32>
    %cst_32 = arith.constant 5.000000e-01 : f32
    %79 = vector.broadcast %cst_32 : f32 to vector<8x128xf32>
    %80 = arith.addf %78, %79 : vector<8x128xf32>
    %81 = arith.mulf %70, %46 : vector<8x128xf32>
    %82 = arith.mulf %62, %72 : vector<8x128xf32>
    %83 = arith.addf %81, %82 : vector<8x128xf32>
    %84 = math.tanh %83 : vector<8x128xf32>
    %85 = arith.mulf %80, %84 : vector<8x128xf32>
    %c2_i32 = arith.constant 2 : i32
    %c8_i32_33 = arith.constant 8 : i32
    %86 = arith.muli %c2_i32, %c8_i32_33 : i32
    %87 = tpu.assume_multiple %86, 8 : i32
    %88 = arith.index_cast %87 : i32 to index
    %c0_34 = arith.constant 0 : index
    %89 = vector.load %arg7[%88, %c0_34] : memref<64x512xf32, #tpu.memory_space<vmem>>, vector<8x512xf32>
    %cst_35 = arith.constant dense<0.000000e+00> : vector<8x512xf32>
    %90 = tpu.matmul %85, %9, %cst_35 {dimension_numbers = #tpu.dot_dimension_numbers<[1], [0], [0], [1], [0, 0, 1, 1], [], []>} : vector<8x128xf32>, vector<128x512xf32>, vector<8x512xf32> -> vector<8x512xf32>
    %91 = arith.addf %89, %90 : vector<8x512xf32>
    %92 = vector.extract_strided_slice %91 {offsets = [0, 0], sizes = [8, 128], strides = [1, 1]} : vector<8x512xf32> to vector<8x128xf32>
    %cst_36 = arith.constant 5.000000e-01 : f32
    %93 = vector.broadcast %cst_36 : f32 to vector<8x128xf32>
    %94 = arith.mulf %93, %92 : vector<8x128xf32>
    %95 = math.tanh %94 : vector<8x128xf32>
    %cst_37 = arith.constant 5.000000e-01 : f32
    %96 = vector.broadcast %cst_37 : f32 to vector<8x128xf32>
    %97 = arith.mulf %96, %95 : vector<8x128xf32>
    %cst_38 = arith.constant 5.000000e-01 : f32
    %98 = vector.broadcast %cst_38 : f32 to vector<8x128xf32>
    %99 = arith.addf %97, %98 : vector<8x128xf32>
    %100 = vector.extract_strided_slice %91 {offsets = [0, 128], sizes = [8, 128], strides = [1, 1]} : vector<8x512xf32> to vector<8x128xf32>
    %cst_39 = arith.constant 5.000000e-01 : f32
    %101 = vector.broadcast %cst_39 : f32 to vector<8x128xf32>
    %102 = arith.mulf %101, %100 : vector<8x128xf32>
    %103 = math.tanh %102 : vector<8x128xf32>
    %cst_40 = arith.constant 5.000000e-01 : f32
    %104 = vector.broadcast %cst_40 : f32 to vector<8x128xf32>
    %105 = arith.mulf %104, %103 : vector<8x128xf32>
    %cst_41 = arith.constant 5.000000e-01 : f32
    %106 = vector.broadcast %cst_41 : f32 to vector<8x128xf32>
    %107 = arith.addf %105, %106 : vector<8x128xf32>
    %108 = vector.extract_strided_slice %91 {offsets = [0, 256], sizes = [8, 128], strides = [1, 1]} : vector<8x512xf32> to vector<8x128xf32>
    %109 = math.tanh %108 : vector<8x128xf32>
    %110 = vector.extract_strided_slice %91 {offsets = [0, 384], sizes = [8, 128], strides = [1, 1]} : vector<8x512xf32> to vector<8x128xf32>
    %cst_42 = arith.constant 5.000000e-01 : f32
    %111 = vector.broadcast %cst_42 : f32 to vector<8x128xf32>
    %112 = arith.mulf %111, %110 : vector<8x128xf32>
    %113 = math.tanh %112 : vector<8x128xf32>
    %cst_43 = arith.constant 5.000000e-01 : f32
    %114 = vector.broadcast %cst_43 : f32 to vector<8x128xf32>
    %115 = arith.mulf %114, %113 : vector<8x128xf32>
    %cst_44 = arith.constant 5.000000e-01 : f32
    %116 = vector.broadcast %cst_44 : f32 to vector<8x128xf32>
    %117 = arith.addf %115, %116 : vector<8x128xf32>
    %118 = arith.mulf %107, %83 : vector<8x128xf32>
    %119 = arith.mulf %99, %109 : vector<8x128xf32>
    %120 = arith.addf %118, %119 : vector<8x128xf32>
    %121 = math.tanh %120 : vector<8x128xf32>
    %122 = arith.mulf %117, %121 : vector<8x128xf32>
    %c3_i32 = arith.constant 3 : i32
    %c8_i32_45 = arith.constant 8 : i32
    %123 = arith.muli %c3_i32, %c8_i32_45 : i32
    %124 = tpu.assume_multiple %123, 8 : i32
    %125 = arith.index_cast %124 : i32 to index
    %c0_46 = arith.constant 0 : index
    %126 = vector.load %arg7[%125, %c0_46] : memref<64x512xf32, #tpu.memory_space<vmem>>, vector<8x512xf32>
    %cst_47 = arith.constant dense<0.000000e+00> : vector<8x512xf32>
    %127 = tpu.matmul %122, %9, %cst_47 {dimension_numbers = #tpu.dot_dimension_numbers<[1], [0], [0], [1], [0, 0, 1, 1], [], []>} : vector<8x128xf32>, vector<128x512xf32>, vector<8x512xf32> -> vector<8x512xf32>
    %128 = arith.addf %126, %127 : vector<8x512xf32>
    %129 = vector.extract_strided_slice %128 {offsets = [0, 0], sizes = [8, 128], strides = [1, 1]} : vector<8x512xf32> to vector<8x128xf32>
    %cst_48 = arith.constant 5.000000e-01 : f32
    %130 = vector.broadcast %cst_48 : f32 to vector<8x128xf32>
    %131 = arith.mulf %130, %129 : vector<8x128xf32>
    %132 = math.tanh %131 : vector<8x128xf32>
    %cst_49 = arith.constant 5.000000e-01 : f32
    %133 = vector.broadcast %cst_49 : f32 to vector<8x128xf32>
    %134 = arith.mulf %133, %132 : vector<8x128xf32>
    %cst_50 = arith.constant 5.000000e-01 : f32
    %135 = vector.broadcast %cst_50 : f32 to vector<8x128xf32>
    %136 = arith.addf %134, %135 : vector<8x128xf32>
    %137 = vector.extract_strided_slice %128 {offsets = [0, 128], sizes = [8, 128], strides = [1, 1]} : vector<8x512xf32> to vector<8x128xf32>
    %cst_51 = arith.constant 5.000000e-01 : f32
    %138 = vector.broadcast %cst_51 : f32 to vector<8x128xf32>
    %139 = arith.mulf %138, %137 : vector<8x128xf32>
    %140 = math.tanh %139 : vector<8x128xf32>
    %cst_52 = arith.constant 5.000000e-01 : f32
    %141 = vector.broadcast %cst_52 : f32 to vector<8x128xf32>
    %142 = arith.mulf %141, %140 : vector<8x128xf32>
    %cst_53 = arith.constant 5.000000e-01 : f32
    %143 = vector.broadcast %cst_53 : f32 to vector<8x128xf32>
    %144 = arith.addf %142, %143 : vector<8x128xf32>
    %145 = vector.extract_strided_slice %128 {offsets = [0, 256], sizes = [8, 128], strides = [1, 1]} : vector<8x512xf32> to vector<8x128xf32>
    %146 = math.tanh %145 : vector<8x128xf32>
    %147 = vector.extract_strided_slice %128 {offsets = [0, 384], sizes = [8, 128], strides = [1, 1]} : vector<8x512xf32> to vector<8x128xf32>
    %cst_54 = arith.constant 5.000000e-01 : f32
    %148 = vector.broadcast %cst_54 : f32 to vector<8x128xf32>
    %149 = arith.mulf %148, %147 : vector<8x128xf32>
    %150 = math.tanh %149 : vector<8x128xf32>
    %cst_55 = arith.constant 5.000000e-01 : f32
    %151 = vector.broadcast %cst_55 : f32 to vector<8x128xf32>
    %152 = arith.mulf %151, %150 : vector<8x128xf32>
    %cst_56 = arith.constant 5.000000e-01 : f32
    %153 = vector.broadcast %cst_56 : f32 to vector<8x128xf32>
    %154 = arith.addf %152, %153 : vector<8x128xf32>
    %155 = arith.mulf %144, %120 : vector<8x128xf32>
    %156 = arith.mulf %136, %146 : vector<8x128xf32>
    %157 = arith.addf %155, %156 : vector<8x128xf32>
    %158 = math.tanh %157 : vector<8x128xf32>
    %159 = arith.mulf %154, %158 : vector<8x128xf32>
    %c4_i32 = arith.constant 4 : i32
    %c8_i32_57 = arith.constant 8 : i32
    %160 = arith.muli %c4_i32, %c8_i32_57 : i32
    %161 = tpu.assume_multiple %160, 8 : i32
    %162 = arith.index_cast %161 : i32 to index
    %c0_58 = arith.constant 0 : index
    %163 = vector.load %arg7[%162, %c0_58] : memref<64x512xf32, #tpu.memory_space<vmem>>, vector<8x512xf32>
    %cst_59 = arith.constant dense<0.000000e+00> : vector<8x512xf32>
    %164 = tpu.matmul %159, %9, %cst_59 {dimension_numbers = #tpu.dot_dimension_numbers<[1], [0], [0], [1], [0, 0, 1, 1], [], []>} : vector<8x128xf32>, vector<128x512xf32>, vector<8x512xf32> -> vector<8x512xf32>
    %165 = arith.addf %163, %164 : vector<8x512xf32>
    %166 = vector.extract_strided_slice %165 {offsets = [0, 0], sizes = [8, 128], strides = [1, 1]} : vector<8x512xf32> to vector<8x128xf32>
    %cst_60 = arith.constant 5.000000e-01 : f32
    %167 = vector.broadcast %cst_60 : f32 to vector<8x128xf32>
    %168 = arith.mulf %167, %166 : vector<8x128xf32>
    %169 = math.tanh %168 : vector<8x128xf32>
    %cst_61 = arith.constant 5.000000e-01 : f32
    %170 = vector.broadcast %cst_61 : f32 to vector<8x128xf32>
    %171 = arith.mulf %170, %169 : vector<8x128xf32>
    %cst_62 = arith.constant 5.000000e-01 : f32
    %172 = vector.broadcast %cst_62 : f32 to vector<8x128xf32>
    %173 = arith.addf %171, %172 : vector<8x128xf32>
    %174 = vector.extract_strided_slice %165 {offsets = [0, 128], sizes = [8, 128], strides = [1, 1]} : vector<8x512xf32> to vector<8x128xf32>
    %cst_63 = arith.constant 5.000000e-01 : f32
    %175 = vector.broadcast %cst_63 : f32 to vector<8x128xf32>
    %176 = arith.mulf %175, %174 : vector<8x128xf32>
    %177 = math.tanh %176 : vector<8x128xf32>
    %cst_64 = arith.constant 5.000000e-01 : f32
    %178 = vector.broadcast %cst_64 : f32 to vector<8x128xf32>
    %179 = arith.mulf %178, %177 : vector<8x128xf32>
    %cst_65 = arith.constant 5.000000e-01 : f32
    %180 = vector.broadcast %cst_65 : f32 to vector<8x128xf32>
    %181 = arith.addf %179, %180 : vector<8x128xf32>
    %182 = vector.extract_strided_slice %165 {offsets = [0, 256], sizes = [8, 128], strides = [1, 1]} : vector<8x512xf32> to vector<8x128xf32>
    %183 = math.tanh %182 : vector<8x128xf32>
    %184 = vector.extract_strided_slice %165 {offsets = [0, 384], sizes = [8, 128], strides = [1, 1]} : vector<8x512xf32> to vector<8x128xf32>
    %cst_66 = arith.constant 5.000000e-01 : f32
    %185 = vector.broadcast %cst_66 : f32 to vector<8x128xf32>
    %186 = arith.mulf %185, %184 : vector<8x128xf32>
    %187 = math.tanh %186 : vector<8x128xf32>
    %cst_67 = arith.constant 5.000000e-01 : f32
    %188 = vector.broadcast %cst_67 : f32 to vector<8x128xf32>
    %189 = arith.mulf %188, %187 : vector<8x128xf32>
    %cst_68 = arith.constant 5.000000e-01 : f32
    %190 = vector.broadcast %cst_68 : f32 to vector<8x128xf32>
    %191 = arith.addf %189, %190 : vector<8x128xf32>
    %192 = arith.mulf %181, %157 : vector<8x128xf32>
    %193 = arith.mulf %173, %183 : vector<8x128xf32>
    %194 = arith.addf %192, %193 : vector<8x128xf32>
    %195 = math.tanh %194 : vector<8x128xf32>
    %196 = arith.mulf %191, %195 : vector<8x128xf32>
    %c5_i32 = arith.constant 5 : i32
    %c8_i32_69 = arith.constant 8 : i32
    %197 = arith.muli %c5_i32, %c8_i32_69 : i32
    %198 = tpu.assume_multiple %197, 8 : i32
    %199 = arith.index_cast %198 : i32 to index
    %c0_70 = arith.constant 0 : index
    %200 = vector.load %arg7[%199, %c0_70] : memref<64x512xf32, #tpu.memory_space<vmem>>, vector<8x512xf32>
    %cst_71 = arith.constant dense<0.000000e+00> : vector<8x512xf32>
    %201 = tpu.matmul %196, %9, %cst_71 {dimension_numbers = #tpu.dot_dimension_numbers<[1], [0], [0], [1], [0, 0, 1, 1], [], []>} : vector<8x128xf32>, vector<128x512xf32>, vector<8x512xf32> -> vector<8x512xf32>
    %202 = arith.addf %200, %201 : vector<8x512xf32>
    %203 = vector.extract_strided_slice %202 {offsets = [0, 0], sizes = [8, 128], strides = [1, 1]} : vector<8x512xf32> to vector<8x128xf32>
    %cst_72 = arith.constant 5.000000e-01 : f32
    %204 = vector.broadcast %cst_72 : f32 to vector<8x128xf32>
    %205 = arith.mulf %204, %203 : vector<8x128xf32>
    %206 = math.tanh %205 : vector<8x128xf32>
    %cst_73 = arith.constant 5.000000e-01 : f32
    %207 = vector.broadcast %cst_73 : f32 to vector<8x128xf32>
    %208 = arith.mulf %207, %206 : vector<8x128xf32>
    %cst_74 = arith.constant 5.000000e-01 : f32
    %209 = vector.broadcast %cst_74 : f32 to vector<8x128xf32>
    %210 = arith.addf %208, %209 : vector<8x128xf32>
    %211 = vector.extract_strided_slice %202 {offsets = [0, 128], sizes = [8, 128], strides = [1, 1]} : vector<8x512xf32> to vector<8x128xf32>
    %cst_75 = arith.constant 5.000000e-01 : f32
    %212 = vector.broadcast %cst_75 : f32 to vector<8x128xf32>
    %213 = arith.mulf %212, %211 : vector<8x128xf32>
    %214 = math.tanh %213 : vector<8x128xf32>
    %cst_76 = arith.constant 5.000000e-01 : f32
    %215 = vector.broadcast %cst_76 : f32 to vector<8x128xf32>
    %216 = arith.mulf %215, %214 : vector<8x128xf32>
    %cst_77 = arith.constant 5.000000e-01 : f32
    %217 = vector.broadcast %cst_77 : f32 to vector<8x128xf32>
    %218 = arith.addf %216, %217 : vector<8x128xf32>
    %219 = vector.extract_strided_slice %202 {offsets = [0, 256], sizes = [8, 128], strides = [1, 1]} : vector<8x512xf32> to vector<8x128xf32>
    %220 = math.tanh %219 : vector<8x128xf32>
    %221 = vector.extract_strided_slice %202 {offsets = [0, 384], sizes = [8, 128], strides = [1, 1]} : vector<8x512xf32> to vector<8x128xf32>
    %cst_78 = arith.constant 5.000000e-01 : f32
    %222 = vector.broadcast %cst_78 : f32 to vector<8x128xf32>
    %223 = arith.mulf %222, %221 : vector<8x128xf32>
    %224 = math.tanh %223 : vector<8x128xf32>
    %cst_79 = arith.constant 5.000000e-01 : f32
    %225 = vector.broadcast %cst_79 : f32 to vector<8x128xf32>
    %226 = arith.mulf %225, %224 : vector<8x128xf32>
    %cst_80 = arith.constant 5.000000e-01 : f32
    %227 = vector.broadcast %cst_80 : f32 to vector<8x128xf32>
    %228 = arith.addf %226, %227 : vector<8x128xf32>
    %229 = arith.mulf %218, %194 : vector<8x128xf32>
    %230 = arith.mulf %210, %220 : vector<8x128xf32>
    %231 = arith.addf %229, %230 : vector<8x128xf32>
    %232 = math.tanh %231 : vector<8x128xf32>
    %233 = arith.mulf %228, %232 : vector<8x128xf32>
    %c6_i32 = arith.constant 6 : i32
    %c8_i32_81 = arith.constant 8 : i32
    %234 = arith.muli %c6_i32, %c8_i32_81 : i32
    %235 = tpu.assume_multiple %234, 8 : i32
    %236 = arith.index_cast %235 : i32 to index
    %c0_82 = arith.constant 0 : index
    %237 = vector.load %arg7[%236, %c0_82] : memref<64x512xf32, #tpu.memory_space<vmem>>, vector<8x512xf32>
    %cst_83 = arith.constant dense<0.000000e+00> : vector<8x512xf32>
    %238 = tpu.matmul %233, %9, %cst_83 {dimension_numbers = #tpu.dot_dimension_numbers<[1], [0], [0], [1], [0, 0, 1, 1], [], []>} : vector<8x128xf32>, vector<128x512xf32>, vector<8x512xf32> -> vector<8x512xf32>
    %239 = arith.addf %237, %238 : vector<8x512xf32>
    %240 = vector.extract_strided_slice %239 {offsets = [0, 0], sizes = [8, 128], strides = [1, 1]} : vector<8x512xf32> to vector<8x128xf32>
    %cst_84 = arith.constant 5.000000e-01 : f32
    %241 = vector.broadcast %cst_84 : f32 to vector<8x128xf32>
    %242 = arith.mulf %241, %240 : vector<8x128xf32>
    %243 = math.tanh %242 : vector<8x128xf32>
    %cst_85 = arith.constant 5.000000e-01 : f32
    %244 = vector.broadcast %cst_85 : f32 to vector<8x128xf32>
    %245 = arith.mulf %244, %243 : vector<8x128xf32>
    %cst_86 = arith.constant 5.000000e-01 : f32
    %246 = vector.broadcast %cst_86 : f32 to vector<8x128xf32>
    %247 = arith.addf %245, %246 : vector<8x128xf32>
    %248 = vector.extract_strided_slice %239 {offsets = [0, 128], sizes = [8, 128], strides = [1, 1]} : vector<8x512xf32> to vector<8x128xf32>
    %cst_87 = arith.constant 5.000000e-01 : f32
    %249 = vector.broadcast %cst_87 : f32 to vector<8x128xf32>
    %250 = arith.mulf %249, %248 : vector<8x128xf32>
    %251 = math.tanh %250 : vector<8x128xf32>
    %cst_88 = arith.constant 5.000000e-01 : f32
    %252 = vector.broadcast %cst_88 : f32 to vector<8x128xf32>
    %253 = arith.mulf %252, %251 : vector<8x128xf32>
    %cst_89 = arith.constant 5.000000e-01 : f32
    %254 = vector.broadcast %cst_89 : f32 to vector<8x128xf32>
    %255 = arith.addf %253, %254 : vector<8x128xf32>
    %256 = vector.extract_strided_slice %239 {offsets = [0, 256], sizes = [8, 128], strides = [1, 1]} : vector<8x512xf32> to vector<8x128xf32>
    %257 = math.tanh %256 : vector<8x128xf32>
    %258 = vector.extract_strided_slice %239 {offsets = [0, 384], sizes = [8, 128], strides = [1, 1]} : vector<8x512xf32> to vector<8x128xf32>
    %cst_90 = arith.constant 5.000000e-01 : f32
    %259 = vector.broadcast %cst_90 : f32 to vector<8x128xf32>
    %260 = arith.mulf %259, %258 : vector<8x128xf32>
    %261 = math.tanh %260 : vector<8x128xf32>
    %cst_91 = arith.constant 5.000000e-01 : f32
    %262 = vector.broadcast %cst_91 : f32 to vector<8x128xf32>
    %263 = arith.mulf %262, %261 : vector<8x128xf32>
    %cst_92 = arith.constant 5.000000e-01 : f32
    %264 = vector.broadcast %cst_92 : f32 to vector<8x128xf32>
    %265 = arith.addf %263, %264 : vector<8x128xf32>
    %266 = arith.mulf %255, %231 : vector<8x128xf32>
    %267 = arith.mulf %247, %257 : vector<8x128xf32>
    %268 = arith.addf %266, %267 : vector<8x128xf32>
    %269 = math.tanh %268 : vector<8x128xf32>
    %270 = arith.mulf %265, %269 : vector<8x128xf32>
    %c7_i32 = arith.constant 7 : i32
    %c8_i32_93 = arith.constant 8 : i32
    %271 = arith.muli %c7_i32, %c8_i32_93 : i32
    %272 = tpu.assume_multiple %271, 8 : i32
    %273 = arith.index_cast %272 : i32 to index
    %c0_94 = arith.constant 0 : index
    %274 = vector.load %arg7[%273, %c0_94] : memref<64x512xf32, #tpu.memory_space<vmem>>, vector<8x512xf32>
    %cst_95 = arith.constant dense<0.000000e+00> : vector<8x512xf32>
    %275 = tpu.matmul %270, %9, %cst_95 {dimension_numbers = #tpu.dot_dimension_numbers<[1], [0], [0], [1], [0, 0, 1, 1], [], []>} : vector<8x128xf32>, vector<128x512xf32>, vector<8x512xf32> -> vector<8x512xf32>
    %276 = arith.addf %274, %275 : vector<8x512xf32>
    %277 = vector.extract_strided_slice %276 {offsets = [0, 0], sizes = [8, 128], strides = [1, 1]} : vector<8x512xf32> to vector<8x128xf32>
    %cst_96 = arith.constant 5.000000e-01 : f32
    %278 = vector.broadcast %cst_96 : f32 to vector<8x128xf32>
    %279 = arith.mulf %278, %277 : vector<8x128xf32>
    %280 = math.tanh %279 : vector<8x128xf32>
    %cst_97 = arith.constant 5.000000e-01 : f32
    %281 = vector.broadcast %cst_97 : f32 to vector<8x128xf32>
    %282 = arith.mulf %281, %280 : vector<8x128xf32>
    %cst_98 = arith.constant 5.000000e-01 : f32
    %283 = vector.broadcast %cst_98 : f32 to vector<8x128xf32>
    %284 = arith.addf %282, %283 : vector<8x128xf32>
    %285 = vector.extract_strided_slice %276 {offsets = [0, 128], sizes = [8, 128], strides = [1, 1]} : vector<8x512xf32> to vector<8x128xf32>
    %cst_99 = arith.constant 5.000000e-01 : f32
    %286 = vector.broadcast %cst_99 : f32 to vector<8x128xf32>
    %287 = arith.mulf %286, %285 : vector<8x128xf32>
    %288 = math.tanh %287 : vector<8x128xf32>
    %cst_100 = arith.constant 5.000000e-01 : f32
    %289 = vector.broadcast %cst_100 : f32 to vector<8x128xf32>
    %290 = arith.mulf %289, %288 : vector<8x128xf32>
    %cst_101 = arith.constant 5.000000e-01 : f32
    %291 = vector.broadcast %cst_101 : f32 to vector<8x128xf32>
    %292 = arith.addf %290, %291 : vector<8x128xf32>
    %293 = vector.extract_strided_slice %276 {offsets = [0, 256], sizes = [8, 128], strides = [1, 1]} : vector<8x512xf32> to vector<8x128xf32>
    %294 = math.tanh %293 : vector<8x128xf32>
    %295 = vector.extract_strided_slice %276 {offsets = [0, 384], sizes = [8, 128], strides = [1, 1]} : vector<8x512xf32> to vector<8x128xf32>
    %cst_102 = arith.constant 5.000000e-01 : f32
    %296 = vector.broadcast %cst_102 : f32 to vector<8x128xf32>
    %297 = arith.mulf %296, %295 : vector<8x128xf32>
    %298 = math.tanh %297 : vector<8x128xf32>
    %cst_103 = arith.constant 5.000000e-01 : f32
    %299 = vector.broadcast %cst_103 : f32 to vector<8x128xf32>
    %300 = arith.mulf %299, %298 : vector<8x128xf32>
    %cst_104 = arith.constant 5.000000e-01 : f32
    %301 = vector.broadcast %cst_104 : f32 to vector<8x128xf32>
    %302 = arith.addf %300, %301 : vector<8x128xf32>
    %303 = arith.mulf %292, %268 : vector<8x128xf32>
    %304 = arith.mulf %284, %294 : vector<8x128xf32>
    %305 = arith.addf %303, %304 : vector<8x128xf32>
    %306 = math.tanh %305 : vector<8x128xf32>
    %307 = arith.mulf %302, %306 : vector<8x128xf32>
    %c8_i32_105 = arith.constant 8 : i32
    %c0_106 = arith.constant 0 : index
    %c0_107 = arith.constant 0 : index
    %308 = vector.load %arg4[%c0_106, %c0_107] : memref<128x128xf32, #tpu.memory_space<vmem>>, vector<128x128xf32>
    %cst_108 = arith.constant dense<0.000000e+00> : vector<8x128xf32>
    %309 = tpu.matmul %307, %308, %cst_108 {dimension_numbers = #tpu.dot_dimension_numbers<[1], [0], [0], [1], [0, 0, 1, 1], [], []>} : vector<8x128xf32>, vector<128x128xf32>, vector<8x128xf32> -> vector<8x128xf32>
    %c0_109 = arith.constant 0 : index
    %c0_110 = arith.constant 0 : index
    %310 = vector.load %arg5[%c0_109, %c0_110] : memref<1x128xf32, #tpu.memory_space<vmem>>, vector<1x128xf32>
    %311 = vector.broadcast %310 : vector<1x128xf32> to vector<8x128xf32>
    %312 = arith.addf %309, %311 : vector<8x128xf32>
    %c0_111 = arith.constant 0 : index
    %c0_112 = arith.constant 0 : index
    %313 = vector.load %arg6[%c0_111, %c0_112] : memref<8x128xf32, #tpu.memory_space<vmem>>, vector<8x128xf32>
    tpu.vector_store %arg6[%c0_111, %c0_112], %312 {strides = array<i32>} : memref<8x128xf32, #tpu.memory_space<vmem>>, vector<8x128xf32>,
    return
  }
}

</mosaic_0001>

<bundles_post_ra>
// kernel: predict_simple_formula_net.1
= control target key start
LH: loop header
LB: loop body
LE: loop exit
PB: predicated region body
PF: predicated region fallthrough
CT: control target
= control target key end

     0   :  { %v2712_v3 = vmov 0   ;;  %s2705_s2 = inlined_call_operand.vmem [shape: f32[128,512], index: 2, kind: input, shape index: {}]   ;;  %s2706_s0 = inlined_call_operand.vmem [shape: f32[64,1], index: 0, kind: input, shape index: {}]   ;;  %s2707_s1 = inlined_call_operand.vmem [shape: f32[1,512], index: 1, kind: input, shape index: {}]   ;;  %s2708_s3 = inlined_call_operand.vmem [shape: f32[1,512], index: 3, kind: input, shape index: {}]   ;;  %s2709_s4 = inlined_call_operand.vmem [shape: f32[128,128], index: 4, kind: input, shape index: {}]   ;;  %s2710_s5 = inlined_call_operand.vmem [shape: f32[1,128], index: 5, kind: input, shape index: {}]   ;;  %s2711_s6 = inlined_call_operand.vmem [shape: f32[8,128], index: 6, kind: output, shape index: {}]  }
   0x1   :  { %v1365_v0 = vld [vmem:[%s2705_s2 + $0x1e0] sm:$0xff]  ;;  %v1370_v1 = vld [vmem:[%s2705_s2 + $0x1e8] sm:$0xff]  ;;  %v1375_v2 = vld [vmem:[%s2705_s2 + $0x1f0] sm:$0xff]  ;;  %1177 = vset.pattern.permute.xlu0 %v2712_v3  ;;  %1178 = vset.pattern.permute.xlu1 %v2712_v3 }
   0x2   :  { %258 = vmatpush.msra.mxu0 %v1365_v0  ;;  %278 = vmatpush.msra.mxu1 %v1370_v1  ;;  %v1384_v4 = vld [vmem:[%s2705_s2 + $0x1f8] sm:$0xff]  ;;  %v1389_v5 = vld [vmem:[%s2705_s2 + $0x1c0] sm:$0xff]  ;;  %v1394_v6 = vld [vmem:[%s2705_s2 + $0x1c8] sm:$0xff] }
   0x3   :  { %298 = vmatpush.msra.mxu2 %v1375_v2  ;;  %318 = vmatpush.msra.mxu3 %v1384_v4  ;;  %v1401_v7 = vld [vmem:[%s2705_s2 + $0x1d0] sm:$0xff]  ;;  %v1406_v8 = vld [vmem:[%s2705_s2 + $0x1d8] sm:$0xff]  ;;  %v1411_v9 = vld [vmem:[%s2705_s2 + $0x1a0] sm:$0xff] }
   0x4   :  { %259 = vmatpush.msra.mxu0 %v1389_v5  ;;  %279 = vmatpush.msra.mxu1 %v1394_v6  ;;  %v1418_v10 = vld [vmem:[%s2705_s2 + $0x1a8] sm:$0xff]  ;;  %v1423_v11 = vld [vmem:[%s2705_s2 + $0x1b0] sm:$0xff]  ;;  %v1428_v12 = vld [vmem:[%s2705_s2 + $0x1b8] sm:$0xff] }
   0x5   :  { %299 = vmatpush.msra.mxu2 %v1401_v7  ;;  %319 = vmatpush.msra.mxu3 %v1406_v8  ;;  %v1435_v13 = vld [vmem:[%s2705_s2 + $0x180] sm:$0xff]  ;;  %v1440_v14 = vld [vmem:[%s2705_s2 + $0x188] sm:$0xff]  ;;  %v1447_v15 = vld [vmem:[%s2705_s2 + $0x190] sm:$0xff] }
   0x6   :  { %260 = vmatpush.msra.mxu0 %v1411_v9  ;;  %280 = vmatpush.msra.mxu1 %v1418_v10  ;;  %v1452_v16 = vld [vmem:[%s2705_s2 + $0x198] sm:$0xff]  ;;  %v1459_v17 = vld [vmem:[%s2705_s2 + $0x160] sm:$0xff]  ;;  %v1464_v18 = vld [vmem:[%s2705_s2 + $0x168] sm:$0xff] }
   0x7   :  { %300 = vmatpush.msra.mxu2 %v1423_v11  ;;  %320 = vmatpush.msra.mxu3 %v1428_v12  ;;  %v1471_v19 = vld [vmem:[%s2705_s2 + $0x170] sm:$0xff]  ;;  %v1476_v20 = vld [vmem:[%s2705_s2 + $0x178] sm:$0xff]  ;;  %v1483_v21 = vld [vmem:[%s2705_s2 + $0x140] sm:$0xff] }
   0x8   :  { %261 = vmatpush.msra.mxu0 %v1435_v13  ;;  %281 = vmatpush.msra.mxu1 %v1440_v14  ;;  %v1488_v22 = vld [vmem:[%s2705_s2 + $0x148] sm:$0xff]  ;;  %v1495_v23 = vld [vmem:[%s2705_s2 + $0x150] sm:$0xff]  ;;  %v1500_v24 = vld [vmem:[%s2705_s2 + $0x158] sm:$0xff] }
   0x9   :  { %301 = vmatpush.msra.mxu2 %v1447_v15  ;;  %321 = vmatpush.msra.mxu3 %v1452_v16  ;;  %v1507_v25 = vld [vmem:[%s2705_s2 + $0x120] sm:$0xff]  ;;  %v1512_v26 = vld [vmem:[%s2705_s2 + $0x128] sm:$0xff]  ;;  %v1519_v27 = vld [vmem:[%s2705_s2 + $0x130] sm:$0xff] }
   0xa   :  { %262 = vmatpush.msra.mxu0 %v1459_v17  ;;  %282 = vmatpush.msra.mxu1 %v1464_v18  ;;  %v1524_v28 = vld [vmem:[%s2705_s2 + $0x138] sm:$0xff]  ;;  %v1531_v29 = vld [vmem:[%s2705_s2 + $0x100] sm:$0xff]  ;;  %v1536_v30 = vld [vmem:[%s2705_s2 + $0x108] sm:$0xff] }
   0xb   :  { %302 = vmatpush.msra.mxu2 %v1471_v19  ;;  %322 = vmatpush.msra.mxu3 %v1476_v20  ;;  %v1543_v31 = vld [vmem:[%s2705_s2 + $0x110] sm:$0xff]  ;;  %v1548_v32 = vld [vmem:[%s2705_s2 + $0x118] sm:$0xff]  ;;  %v1555_v33 = vld [vmem:[%s2705_s2 + $0xe0] sm:$0xff] }
   0xc   :  { %263 = vmatpush.msra.mxu0 %v1483_v21  ;;  %283 = vmatpush.msra.mxu1 %v1488_v22  ;;  %v1560_v34 = vld [vmem:[%s2705_s2 + $0xe8] sm:$0xff]  ;;  %v1567_v35 = vld [vmem:[%s2705_s2 + $0xf0] sm:$0xff]  ;;  %v1572_v36 = vld [vmem:[%s2705_s2 + $0xf8] sm:$0xff] }
   0xd   :  { %303 = vmatpush.msra.mxu2 %v1495_v23  ;;  %323 = vmatpush.msra.mxu3 %v1500_v24  ;;  %v1579_v37 = vld [vmem:[%s2705_s2 + $0xc0] sm:$0xff]  ;;  %v1584_v38 = vld [vmem:[%s2705_s2 + $0xc8] sm:$0xff]  ;;  %v1591_v39 = vld [vmem:[%s2705_s2 + $0xd0] sm:$0xff] }
   0xe   :  { %264 = vmatpush.msra.mxu0 %v1507_v25  ;;  %284 = vmatpush.msra.mxu1 %v1512_v26  ;;  %v1596_v40 = vld [vmem:[%s2705_s2 + $0xd8] sm:$0xff]  ;;  %v1603_v41 = vld [vmem:[%s2705_s2 + $0xa0] sm:$0xff]  ;;  %v1608_v42 = vld [vmem:[%s2705_s2 + $0xa8] sm:$0xff] }
   0xf   :  { %304 = vmatpush.msra.mxu2 %v1519_v27  ;;  %324 = vmatpush.msra.mxu3 %v1524_v28  ;;  %v1615_v43 = vld [vmem:[%s2705_s2 + $0xb0] sm:$0xff]  ;;  %v1620_v44 = vld [vmem:[%s2705_s2 + $0xb8] sm:$0xff]  ;;  %v1627_v45 = vld [vmem:[%s2705_s2 + $0x80] sm:$0xff] }
  0x10   :  { %265 = vmatpush.msra.mxu0 %v1531_v29  ;;  %285 = vmatpush.msra.mxu1 %v1536_v30  ;;  %2820 = vst [vmem:[#allocation3_spill] sm:$0xff] %v1615_v43  ;;  %v1632_v46 = vld [vmem:[%s2705_s2 + $0x88] sm:$0xff]  ;;  %v1639_v47 = vld [vmem:[%s2705_s2 + $0x90] sm:$0xff]  ;;  %v1644_v48 = vld [vmem:[%s2705_s2 + $0x98] sm:$0xff] }
  0x11   :  { %305 = vmatpush.msra.mxu2 %v1543_v31  ;;  %325 = vmatpush.msra.mxu3 %v1548_v32  ;;  %2821 = vst [vmem:[#allocation4_spill] sm:$0xff] %v1620_v44  ;;  %v23_v49 = vld [vmem:[%s2706_s0] sm:$0xff]  ;;  %v1661_v51 = vld [vmem:[%s2705_s2 + $0x68] sm:$0xff]  ;;  %v1666_v52 = vld [vmem:[%s2705_s2 + $0x70] sm:$0xff] }
  0x12   :  { %266 = vmatpush.msra.mxu0 %v1555_v33  ;;  %286 = vmatpush.msra.mxu1 %v1560_v34  ;;  %2822 = vst [vmem:[#allocation5_spill] sm:$0xff] %v1627_v45  ;;  %v1654_v50 = vld [vmem:[%s2705_s2 + $0x60] sm:$0xff]  ;;  %v1673_v53 = vld [vmem:[%s2705_s2 + $0x78] sm:$0xff]  ;;  %v1684_v55 = vld [vmem:[%s2705_s2 + $0x48] sm:$0xff] }
  0x13   :  { %306 = vmatpush.msra.mxu2 %v1567_v35  ;;  %326 = vmatpush.msra.mxu3 %v1572_v36  ;;  %2823 = vst [vmem:[#allocation6_spill] sm:$0xff] %v1632_v46  ;;  %v1678_v54 = vld [vmem:[%s2705_s2 + $0x40] sm:$0xff]  ;;  %v1689_v56 = vld [vmem:[%s2705_s2 + $0x50] sm:$0xff]  ;;  %v1696_v57 = vld [vmem:[%s2705_s2 + $0x58] sm:$0xff] }
  0x14   :  { %267 = vmatpush.msra.mxu0 %v1579_v37  ;;  %287 = vmatpush.msra.mxu1 %v1584_v38  ;;  %2824 = vst [vmem:[#allocation7_spill] sm:$0xff] %v1639_v47  ;;  %v1701_v58 = vld [vmem:[%s2705_s2 + $0x20] sm:$0xff]  ;;  %v1708_v59 = vld [vmem:[%s2705_s2 + $0x28] sm:$0xff]  ;;  %v1713_v60 = vld [vmem:[%s2705_s2 + $0x30] sm:$0xff] }
  0x15   :  { %307 = vmatpush.msra.mxu2 %v1591_v39  ;;  %327 = vmatpush.msra.mxu3 %v1596_v40  ;;  %2825 = vst [vmem:[#allocation8_spill] sm:$0xff] %v1644_v48  ;;  %v1720_v61 = vld [vmem:[%s2705_s2 + $0x38] sm:$0xff]  ;;  %v1725_v62 = vld [vmem:[%s2705_s2] sm:$0xff]  ;;  %v1732_v63 = vld [vmem:[%s2705_s2 + $0x8] sm:$0xff] }
  0x16   :  { %268 = vmatpush.msra.mxu0 %v1603_v41  ;;  %288 = vmatpush.msra.mxu1 %v1608_v42  ;;  %2826 = vst [vmem:[#allocation9_spill] sm:$0xff] %v1654_v50  ;;  %v1744_v3 = vld [vmem:[%s2705_s2 + $0x18] sm:$0xff] }
  0x17   :  { %308 = vmatpush.msra.mxu2 %v1615_v43  ;;  %328 = vmatpush.msra.mxu3 %v1620_v44  ;;  %2827 = vst [vmem:[#allocation10_spill] sm:$0xff] %v1661_v51 }
  0x18   :  { %269 = vmatpush.msra.mxu0 %v1627_v45  ;;  %289 = vmatpush.msra.mxu1 %v1632_v46  ;;  %2828 = vst [vmem:[#allocation11_spill] sm:$0xff] %v1666_v52 }
  0x19   :  { %309 = vmatpush.msra.mxu2 %v1639_v47  ;;  %329 = vmatpush.msra.mxu3 %v1644_v48  ;;  %2829 = vst [vmem:[#allocation12_spill] sm:$0xff] %v1673_v53 }
  0x1a   :  { %2830 = vst [vmem:[#allocation13_spill] sm:$0xff] %v1678_v54  ;;  %34 = vperm.xlu0 %1177, %v23_v49   ;;  %270 = vmatpush.msra.mxu0 %v1654_v50  ;;  %v1737_v49 = vld [vmem:[%s2705_s2 + $0x10] sm:$0xff] }
  0x1b   :  { %2831 = vst [vmem:[#allocation14_spill] sm:$0xff] %v1684_v55  ;;  %290 = vmatpush.msra.mxu1 %v1661_v51  ;;  %310 = vmatpush.msra.mxu2 %v1666_v52 }
  0x1c   :  { %2832 = vst [vmem:[#allocation15_spill] sm:$0xff] %v1689_v56  ;;  %330 = vmatpush.msra.mxu3 %v1673_v53  ;;  %271 = vmatpush.msra.mxu0 %v1678_v54 }
  0x1d   :  { %2833 = vst [vmem:[#allocation16_spill] sm:$0xff] %v1696_v57  ;;  %291 = vmatpush.msra.mxu1 %v1684_v55  ;;  %311 = vmatpush.msra.mxu2 %v1689_v56 }
  0x1e   :  { %2834 = vst [vmem:[#allocation17_spill] sm:$0xff] %v1701_v58  ;;  %331 = vmatpush.msra.mxu3 %v1696_v57  ;;  %272 = vmatpush.msra.mxu0 %v1701_v58  ;;  %v24_v58 = vld [vmem:[%s2706_s0 + $0x8] sm:$0xff] }
  0x1f   :  { %2835 = vst [vmem:[#allocation18_spill] sm:$0xff] %v1708_v59  ;;  %292 = vmatpush.msra.mxu1 %v1708_v59  ;;  %312 = vmatpush.msra.mxu2 %v1713_v60 }
  0x20   :  { %2836 = vst [vmem:[#allocation19_spill] sm:$0xff] %v1713_v60  ;;  %332 = vmatpush.msra.mxu3 %v1720_v61  ;;  %273 = vmatpush.msra.mxu0 %v1725_v62  ;;  %v1326_v60 = vmov 0.0  }
  0x21   :  { %2837 = vst [vmem:[#allocation20_spill] sm:$0xff] %v1720_v61  ;;  %293 = vmatpush.msra.mxu1 %v1732_v63  ;;  %313 = vmatpush.msra.mxu2 %v1737_v49 }
  0x22   :  { %2838 = vst [vmem:[#allocation21_spill] sm:$0xff] %v1725_v62  ;;  %333 = vmatpush.msra.mxu3 %v1744_v3  ;;  %39 = vperm.xlu0 %1177, %v24_v58  }
  0x23   :  { %2839 = vst [vmem:[#allocation22_spill] sm:$0xff] %v1732_v63  ;;  %274 = vmatmul.f32.vlgmr.msra.gmra.mxu0 %v1326_v60  ;;  %294 = vmatmul.f32.vlgmr.msra.gmra.mxu1 %v1326_v60 }
  0x24   :  { %2840 = vst [vmem:[#allocation23_spill] sm:$0xff] %v1737_v49  ;;  %314 = vmatmul.f32.vlgmr.msra.gmra.mxu2 %v1326_v60  ;;  %334 = vmatmul.f32.vlgmr.msra.gmra.mxu3 %v1326_v60  ;;  %v29_v49 = vld [vmem:[%s2706_s0 + $0x30] sm:$0xff] }
  0x25   :  { %2841 = vst [vmem:[#allocation24_spill] sm:$0xff] %v1744_v3  ;;  %367 = vmatpush.msrb.mxu0 %v1365_v0  ;;  %387 = vmatpush.msrb.mxu1 %v1370_v1  ;;  %v2842_v58 = vld [vmem:[#allocation17_spill] sm:$0xff] }
  0x26   :  { %407 = vmatpush.msrb.mxu2 %v1375_v2  ;;  %427 = vmatpush.msrb.mxu3 %v1384_v4 }
  0x27   :  { %368 = vmatpush.msrb.mxu0 %v1389_v5  ;;  %388 = vmatpush.msrb.mxu1 %v1394_v6  ;;  %v2843_v60 = vld [vmem:[#allocation19_spill] sm:$0xff] }
  0x28   :  { %408 = vmatpush.msrb.mxu2 %v1401_v7  ;;  %428 = vmatpush.msrb.mxu3 %v1406_v8 }
  0x29   :  { %369 = vmatpush.msrb.mxu0 %v1411_v9  ;;  %389 = vmatpush.msrb.mxu1 %v1418_v10 }
  0x2a   :  { %64 = vperm.xlu0 %1177, %v29_v49   ;;  %409 = vmatpush.msrb.mxu2 %v1423_v11 }
  0x2b   :  { %429 = vmatpush.msrb.mxu3 %v1428_v12  ;;  %370 = vmatpush.msrb.mxu0 %v1435_v13  ;;  %v2844_v49 = vld [vmem:[#allocation23_spill] sm:$0xff] }
  0x2c   :  { %390 = vmatpush.msrb.mxu1 %v1440_v14  ;;  %410 = vmatpush.msrb.mxu2 %v1447_v15 }
  0x2d   :  { %430 = vmatpush.msrb.mxu3 %v1452_v16  ;;  %371 = vmatpush.msrb.mxu0 %v1459_v17 }
  0x2e   :  { %391 = vmatpush.msrb.mxu1 %v1464_v18  ;;  %411 = vmatpush.msrb.mxu2 %v1471_v19 }
  0x2f   :  { %431 = vmatpush.msrb.mxu3 %v1476_v20  ;;  %372 = vmatpush.msrb.mxu0 %v1483_v21 }
  0x30   :  { %392 = vmatpush.msrb.mxu1 %v1488_v22  ;;  %412 = vmatpush.msrb.mxu2 %v1495_v23 }
  0x31   :  { %432 = vmatpush.msrb.mxu3 %v1500_v24  ;;  %373 = vmatpush.msrb.mxu0 %v1507_v25 }
  0x32   :  { %393 = vmatpush.msrb.mxu1 %v1512_v26  ;;  %413 = vmatpush.msrb.mxu2 %v1519_v27 }
  0x33   :  { %433 = vmatpush.msrb.mxu3 %v1524_v28  ;;  %374 = vmatpush.msrb.mxu0 %v1531_v29 }
  0x34   :  { %394 = vmatpush.msrb.mxu1 %v1536_v30  ;;  %414 = vmatpush.msrb.mxu2 %v1543_v31 }
  0x35   :  { %434 = vmatpush.msrb.mxu3 %v1548_v32  ;;  %375 = vmatpush.msrb.mxu0 %v1555_v33 }
  0x36   :  { %395 = vmatpush.msrb.mxu1 %v1560_v34  ;;  %415 = vmatpush.msrb.mxu2 %v1567_v35 }
  0x37   :  { %435 = vmatpush.msrb.mxu3 %v1572_v36  ;;  %376 = vmatpush.msrb.mxu0 %v1579_v37 }
  0x38   :  { %396 = vmatpush.msrb.mxu1 %v1584_v38  ;;  %416 = vmatpush.msrb.mxu2 %v1591_v39 }
  0x39   :  { %436 = vmatpush.msrb.mxu3 %v1596_v40  ;;  %377 = vmatpush.msrb.mxu0 %v1603_v41 }
  0x3a   :  { %397 = vmatpush.msrb.mxu1 %v1608_v42  ;;  %417 = vmatpush.msrb.mxu2 %v1615_v43 }
  0x3b   :  { %437 = vmatpush.msrb.mxu3 %v1620_v44  ;;  %378 = vmatpush.msrb.mxu0 %v1627_v45 }
  0x3c   :  { %398 = vmatpush.msrb.mxu1 %v1632_v46  ;;  %418 = vmatpush.msrb.mxu2 %v1639_v47 }
  0x3d   :  { %438 = vmatpush.msrb.mxu3 %v1644_v48  ;;  %379 = vmatpush.msrb.mxu0 %v1654_v50 }
  0x3e   :  { %399 = vmatpush.msrb.mxu1 %v1661_v51  ;;  %419 = vmatpush.msrb.mxu2 %v1666_v52 }
  0x3f   :  { %439 = vmatpush.msrb.mxu3 %v1673_v53  ;;  %380 = vmatpush.msrb.mxu0 %v1678_v54 }
  0x40   :  { %400 = vmatpush.msrb.mxu1 %v1684_v55  ;;  %420 = vmatpush.msrb.mxu2 %v1689_v56 }
  0x41   :  { %440 = vmatpush.msrb.mxu3 %v1696_v57  ;;  %381 = vmatpush.msrb.mxu0 %v2842_v58 }
  0x42   :  { %401 = vmatpush.msrb.mxu1 %v1708_v59  ;;  %421 = vmatpush.msrb.mxu2 %v2843_v60 }
  0x43   :  { %441 = vmatpush.msrb.mxu3 %v1720_v61  ;;  %382 = vmatpush.msrb.mxu0 %v1725_v62 }
  0x44   :  { %402 = vmatpush.msrb.mxu1 %v1732_v63  ;;  %422 = vmatpush.msrb.mxu2 %v2844_v49 }
  0x45   :  { %442 = vmatpush.msrb.mxu3 %v1744_v3  ;;  %476 = vmatpush.msra.mxu0 %v1365_v0 }
  0x46   :  { %496 = vmatpush.msra.mxu1 %v1370_v1  ;;  %516 = vmatpush.msra.mxu2 %v1375_v2 }
  0x47   :  { %536 = vmatpush.msra.mxu3 %v1384_v4  ;;  %477 = vmatpush.msra.mxu0 %v1389_v5 }
  0x48   :  { %497 = vmatpush.msra.mxu1 %v1394_v6  ;;  %517 = vmatpush.msra.mxu2 %v1401_v7 }
  0x49   :  { %537 = vmatpush.msra.mxu3 %v1406_v8  ;;  %478 = vmatpush.msra.mxu0 %v1411_v9 }
  0x4a   :  { %498 = vmatpush.msra.mxu1 %v1418_v10  ;;  %518 = vmatpush.msra.mxu2 %v1423_v11 }
  0x4b   :  { %538 = vmatpush.msra.mxu3 %v1428_v12  ;;  %479 = vmatpush.msra.mxu0 %v1435_v13 }
  0x4c   :  { %499 = vmatpush.msra.mxu1 %v1440_v14  ;;  %519 = vmatpush.msra.mxu2 %v1447_v15 }
  0x4d   :  { %539 = vmatpush.msra.mxu3 %v1452_v16  ;;  %480 = vmatpush.msra.mxu0 %v1459_v17 }
  0x4e   :  { %500 = vmatpush.msra.mxu1 %v1464_v18  ;;  %520 = vmatpush.msra.mxu2 %v1471_v19 }
  0x4f   :  { %540 = vmatpush.msra.mxu3 %v1476_v20  ;;  %481 = vmatpush.msra.mxu0 %v1483_v21 }
  0x50   :  { %501 = vmatpush.msra.mxu1 %v1488_v22  ;;  %521 = vmatpush.msra.mxu2 %v1495_v23 }
  0x51   :  { %541 = vmatpush.msra.mxu3 %v1500_v24  ;;  %482 = vmatpush.msra.mxu0 %v1507_v25 }
  0x52   :  { %502 = vmatpush.msra.mxu1 %v1512_v26  ;;  %522 = vmatpush.msra.mxu2 %v1519_v27 }
  0x53   :  { %542 = vmatpush.msra.mxu3 %v1524_v28  ;;  %483 = vmatpush.msra.mxu0 %v1531_v29 }
  0x54   :  { %503 = vmatpush.msra.mxu1 %v1536_v30  ;;  %523 = vmatpush.msra.mxu2 %v1543_v31 }
  0x55   :  { %543 = vmatpush.msra.mxu3 %v1548_v32  ;;  %484 = vmatpush.msra.mxu0 %v1555_v33 }
  0x56   :  { %504 = vmatpush.msra.mxu1 %v1560_v34  ;;  %524 = vmatpush.msra.mxu2 %v1567_v35 }
  0x57   :  { %544 = vmatpush.msra.mxu3 %v1572_v36  ;;  %485 = vmatpush.msra.mxu0 %v1579_v37 }
  0x58   :  { %505 = vmatpush.msra.mxu1 %v1584_v38  ;;  %525 = vmatpush.msra.mxu2 %v1591_v39 }
  0x59   :  { %545 = vmatpush.msra.mxu3 %v1596_v40  ;;  %486 = vmatpush.msra.mxu0 %v1603_v41 }
  0x5a   :  { %506 = vmatpush.msra.mxu1 %v1608_v42  ;;  %526 = vmatpush.msra.mxu2 %v1615_v43 }
  0x5b   :  { %546 = vmatpush.msra.mxu3 %v1620_v44  ;;  %487 = vmatpush.msra.mxu0 %v1627_v45 }
  0x5c   :  { %507 = vmatpush.msra.mxu1 %v1632_v46  ;;  %527 = vmatpush.msra.mxu2 %v1639_v47 }
  0x5d   :  { %547 = vmatpush.msra.mxu3 %v1644_v48  ;;  %488 = vmatpush.msra.mxu0 %v1654_v50 }
  0x5e   :  { %508 = vmatpush.msra.mxu1 %v1661_v51  ;;  %528 = vmatpush.msra.mxu2 %v1666_v52 }
  0x5f   :  { %548 = vmatpush.msra.mxu3 %v1673_v53  ;;  %489 = vmatpush.msra.mxu0 %v1678_v54 }
  0x60   :  { %509 = vmatpush.msra.mxu1 %v1684_v55  ;;  %529 = vmatpush.msra.mxu2 %v1689_v56  ;;  %v2845_v55 = vmov 0  }
  0x61   :  { %549 = vmatpush.msra.mxu3 %v1696_v57  ;;  %490 = vmatpush.msra.mxu0 %v2842_v58  ;;  %v31_v58 = vld [vmem:[%s2707_s1] sm:$0xf] }
  0x62   :  { %510 = vmatpush.msra.mxu1 %v1708_v59  ;;  %530 = vmatpush.msra.mxu2 %v2843_v60  ;;  %v1889_v57 = vperm.slane %v31_v58, 0  ;;  %v1891_v59 = vperm.slane %v31_v58, 1  ;;  %v1904_v54 = vperm.slane %v31_v58, 2  ;;  %v1906_v53 = vperm.slane %v31_v58, 3 }
  0x63   :  { %550 = vmatpush.msra.mxu3 %v1720_v61  ;;  %491 = vmatpush.msra.mxu0 %v1725_v62  ;;  %v113_v62 = vld [vmem:[%s2708_s3] sm:$0xf] }
  0x64   :  { %511 = vmatpush.msra.mxu1 %v1732_v63  ;;  %531 = vmatpush.msra.mxu2 %v2844_v49  ;;  %2846 = vst [vmem:[#allocation25_spill] sm:$0xff] %v1889_v57  ;;  %v1897_v49 = vperm.slane %v113_v62, 0  ;;  %v1909_v47 = vperm.slane %v113_v62, 2  ;;  %v1912_v46 = vperm.slane %v113_v62, 3 }
  0x65   :  { %551 = vmatpush.msra.mxu3 %v1744_v3  ;;  %1179 = vset.pattern.permute.xlu2 %v2845_v55  ;;  %2847 = vst [vmem:[#allocation26_spill] sm:$0xff] %v1891_v59  ;;  %v1900_v55 = vperm.slane %v113_v62, 1 }
  0x66   :  { %2848 = vst [vmem:[#allocation27_spill] sm:$0xff] %v1897_v49 }
  0x67   :  { %2849 = vst [vmem:[#allocation28_spill] sm:$0xff] %v1900_v55 }
  0x68   :  { %2850 = vst [vmem:[#allocation29_spill] sm:$0xff] %v1904_v54 }
  0x69   :  { %2851 = vst [vmem:[#allocation30_spill] sm:$0xff] %v1906_v53 }
  0x6a   :  { %2852 = vst [vmem:[#allocation31_spill] sm:$0xff] %v1909_v47 }
  0x8c   :  { %v35_v61 = vpop.permute.xlu0 %34 }
  0x8d   :  { %v81_v63 = vmul.f32 %v1889_v57, %v35_v61  ;;  %v82_v3 = vmul.f32 %v1891_v59, %v35_v61  ;;  %v83_v57 = vmul.f32 %v1904_v54, %v35_v61  ;;  %v84_v59 = vmul.f32 %v1906_v53, %v35_v61 }
  0x8f   :  { %v123_v60 = vadd.f32 %v1897_v49, %v81_v63  ;;  %v124_v56 = vadd.f32 %v1900_v55, %v82_v3  ;;  %v125_v3 = vadd.f32 %v1909_v47, %v83_v57  ;;  %v126_v58 = vadd.f32 %v1912_v46, %v84_v59 }
  0xa0   :  { %v275_v52 = vpop.f32.mrf.mxu0  ;;  %v295_v51 = vpop.f32.mrf.mxu1 }
  0xa1   :  { %v338_v50 = vadd.f32 %v275_v52, %v123_v60  ;;  %v339_v48 = vadd.f32 %v295_v51, %v124_v56 }
  0xa3   :  { %v342_v45 = vmul.f32 0.5, %v338_v50  ;;  %v346_v63 = vmul.f32 0.5, %v339_v48 }
  0xa5   :  { %1181 = vtanh.f32 %v342_v45 }
  0xa6   :  { %1183 = vtanh.f32 %v346_v63 }
  0xa7   :  { %v315_v55 = vpop.f32.mrf.mxu2  ;;  %v335_v49 = vpop.f32.mrf.mxu3 }
  0xa8   :  { %v340_v52 = vadd.f32 %v315_v55, %v125_v3  ;;  %v341_v51 = vadd.f32 %v335_v49, %v126_v58  ;;  %v2856_v58 = vld [vmem:[#allocation7_spill] sm:$0xff] }
  0xaa   :  { %1185 = vtanh.f32 %v340_v52  ;;  %v351_v56 = vmul.f32 0.5, %v341_v51  ;;  %v2857_v52 = vld [vmem:[#allocation8_spill] sm:$0xff]  ;;  %v2858_v51 = vld [vmem:[#allocation9_spill] sm:$0xff] }
  0xab   :  { %v1182_v60 = vpop.eup %1181 }
  0xac   :  { %v1184_v54 = vpop.eup %1183  ;;  %v344_v44 = vmul.f32 0.5, %v1182_v60  ;;  %1187 = vtanh.f32 %v351_v56  ;;  %v2859_v56 = vld [vmem:[#allocation10_spill] sm:$0xff]  ;;  %v2860_v60 = vld [vmem:[#allocation11_spill] sm:$0xff] }
  0xad   :  { %v348_v61 = vmul.f32 0.5, %v1184_v54  ;;  %v2855_v54 = vld [vmem:[#allocation6_spill] sm:$0xff] }
  0xae   :  { %v345_v62 = vadd.f32 0.5, %v344_v44  ;;  %v2853_v44 = vld [vmem:[#allocation4_spill] sm:$0xff] }
  0xaf   :  { %v349_v50 = vadd.f32 0.5, %v348_v61  ;;  %v2861_v61 = vld [vmem:[#allocation12_spill] sm:$0xff] }
  0xb0   :  { %v1186_v48 = vpop.eup %1185 }
  0xb1   :  { %v355_v45 = vmul.f32 0.0, %v349_v50  ;;  %v356_v63 = vmul.f32 %v1186_v48, %v345_v62  ;;  %v2862_v62 = vld [vmem:[#allocation13_spill] sm:$0xff]  ;;  %v2863_v50 = vld [vmem:[#allocation14_spill] sm:$0xff]  ;;  %v2864_v48 = vld [vmem:[#allocation15_spill] sm:$0xff] }
  0xb2   :  { %v1188_v53 = vpop.eup %1187 }
  0xb3   :  { %v1916_v57 = vadd.f32 %v356_v63, %v355_v45  ;;  %v353_v59 = vmul.f32 0.5, %v1188_v53  ;;  %v2854_v53 = vld [vmem:[#allocation5_spill] sm:$0xff]  ;;  %v2865_v45 = vld [vmem:[#allocation16_spill] sm:$0xff] }
  0xb4   :  { %v2866_v63 = vld [vmem:[#allocation17_spill] sm:$0xff] }
  0xb5   :  { %1189 = vtanh.f32 %v1916_v57  ;;  %v354_v55 = vadd.f32 0.5, %v353_v59  ;;  %v2867_v59 = vld [vmem:[#allocation18_spill] sm:$0xff] }
  0xbb   :  { %v1190_v49 = vpop.eup %1189 }
  0xbc   :  { %v359_v3 = vmul.f32 %v1190_v49, %v354_v55  ;;  %v2868_v55 = vld [vmem:[#allocation19_spill] sm:$0xff]  ;;  %v2869_v49 = vld [vmem:[#allocation20_spill] sm:$0xff] }
  0xbe   :  { %383 = vmatmul.f32.vlgmr.msrb.gmra.mxu0 %v359_v3  ;;  %403 = vmatmul.f32.vlgmr.msrb.gmra.mxu1 %v359_v3 }
  0xbf   :  { %423 = vmatmul.f32.vlgmr.msrb.gmra.mxu2 %v359_v3  ;;  %443 = vmatmul.f32.vlgmr.msrb.gmra.mxu3 %v359_v3  ;;  %v2870_v3 = vld [vmem:[#allocation21_spill] sm:$0xff] }
  0xc0   :  { %585 = vmatpush.msrb.mxu0 %v1365_v0  ;;  %605 = vmatpush.msrb.mxu1 %v1370_v1 }
  0xc1   :  { %625 = vmatpush.msrb.mxu2 %v1375_v2  ;;  %645 = vmatpush.msrb.mxu3 %v1384_v4 }
  0xc2   :  { %586 = vmatpush.msrb.mxu0 %v1389_v5  ;;  %606 = vmatpush.msrb.mxu1 %v1394_v6 }
  0xc3   :  { %626 = vmatpush.msrb.mxu2 %v1401_v7  ;;  %646 = vmatpush.msrb.mxu3 %v1406_v8 }
  0xc4   :  { %587 = vmatpush.msrb.mxu0 %v1411_v9  ;;  %607 = vmatpush.msrb.mxu1 %v1418_v10 }
  0xc5   :  { %627 = vmatpush.msrb.mxu2 %v1423_v11  ;;  %647 = vmatpush.msrb.mxu3 %v1428_v12 }
  0xc6   :  { %588 = vmatpush.msrb.mxu0 %v1435_v13  ;;  %608 = vmatpush.msrb.mxu1 %v1440_v14 }
  0xc7   :  { %628 = vmatpush.msrb.mxu2 %v1447_v15  ;;  %648 = vmatpush.msrb.mxu3 %v1452_v16 }
  0xc8   :  { %589 = vmatpush.msrb.mxu0 %v1459_v17  ;;  %609 = vmatpush.msrb.mxu1 %v1464_v18 }
  0xc9   :  { %629 = vmatpush.msrb.mxu2 %v1471_v19  ;;  %649 = vmatpush.msrb.mxu3 %v1476_v20 }
  0xca   :  { %590 = vmatpush.msrb.mxu0 %v1483_v21  ;;  %610 = vmatpush.msrb.mxu1 %v1488_v22 }
  0xcb   :  { %630 = vmatpush.msrb.mxu2 %v1495_v23  ;;  %650 = vmatpush.msrb.mxu3 %v1500_v24 }
  0xcc   :  { %591 = vmatpush.msrb.mxu0 %v1507_v25  ;;  %611 = vmatpush.msrb.mxu1 %v1512_v26 }
  0xcd   :  { %631 = vmatpush.msrb.mxu2 %v1519_v27  ;;  %651 = vmatpush.msrb.mxu3 %v1524_v28 }
  0xce   :  { %592 = vmatpush.msrb.mxu0 %v1531_v29  ;;  %612 = vmatpush.msrb.mxu1 %v1536_v30 }
  0xcf   :  { %632 = vmatpush.msrb.mxu2 %v1543_v31  ;;  %652 = vmatpush.msrb.mxu3 %v1548_v32 }
  0xd0   :  { %593 = vmatpush.msrb.mxu0 %v1555_v33  ;;  %613 = vmatpush.msrb.mxu1 %v1560_v34 }
  0xd1   :  { %633 = vmatpush.msrb.mxu2 %v1567_v35  ;;  %653 = vmatpush.msrb.mxu3 %v1572_v36 }
  0xd2   :  { %594 = vmatpush.msrb.mxu0 %v1579_v37  ;;  %614 = vmatpush.msrb.mxu1 %v1584_v38 }
  0xd3   :  { %634 = vmatpush.msrb.mxu2 %v1591_v39  ;;  %654 = vmatpush.msrb.mxu3 %v1596_v40 }
  0xd4   :  { %595 = vmatpush.msrb.mxu0 %v1603_v41  ;;  %615 = vmatpush.msrb.mxu1 %v1608_v42 }
  0xd5   :  { %635 = vmatpush.msrb.mxu2 %v1615_v43  ;;  %655 = vmatpush.msrb.mxu3 %v2853_v44 }
  0xd6   :  { %596 = vmatpush.msrb.mxu0 %v2854_v53  ;;  %616 = vmatpush.msrb.mxu1 %v2855_v54  ;;  %v2878_v54 = vld [vmem:[#allocation29_spill] sm:$0xff]  ;;  %v2879_v53 = vld [vmem:[#allocation30_spill] sm:$0xff] }
  0xd7   :  { %636 = vmatpush.msrb.mxu2 %v2856_v58  ;;  %656 = vmatpush.msrb.mxu3 %v2857_v52 }
  0xd8   :  { %597 = vmatpush.msrb.mxu0 %v2858_v51  ;;  %617 = vmatpush.msrb.mxu1 %v2859_v56 }
  0xd9   :  { %637 = vmatpush.msrb.mxu2 %v2860_v60  ;;  %657 = vmatpush.msrb.mxu3 %v2861_v61  ;;  %v2871_v60 = vld [vmem:[#allocation22_spill] sm:$0xff]  ;;  %v2872_v61 = vld [vmem:[#allocation23_spill] sm:$0xff] }
  0xda   :  { %598 = vmatpush.msrb.mxu0 %v2862_v62  ;;  %618 = vmatpush.msrb.mxu1 %v2863_v50  ;;  %v2873_v62 = vld [vmem:[#allocation24_spill] sm:$0xff]  ;;  %v2875_v50 = vld [vmem:[#allocation26_spill] sm:$0xff] }
  0xdb   :  { %638 = vmatpush.msrb.mxu2 %v2864_v48  ;;  %658 = vmatpush.msrb.mxu3 %v2865_v45  ;;  %v25_v45 = vld [vmem:[%s2706_s0 + $0x10] sm:$0xff] }
  0xdc   :  { %599 = vmatpush.msrb.mxu0 %v2866_v63  ;;  %619 = vmatpush.msrb.mxu1 %v2867_v59  ;;  %v40_v63 = vpop.permute.xlu0 %39  ;;  %v2874_v48 = vld [vmem:[#allocation25_spill] sm:$0xff] }
  0xdd   :  { %639 = vmatpush.msrb.mxu2 %v2868_v55  ;;  %659 = vmatpush.msrb.mxu3 %v2869_v49  ;;  %v85_v59 = vmul.f32 %v2874_v48, %v40_v63  ;;  %v86_v55 = vmul.f32 %v2875_v50, %v40_v63  ;;  %v88_v44 = vmul.f32 %v2879_v53, %v40_v63  ;;  %v30_v50 = vld [vmem:[%s2706_s0 + $0x38] sm:$0xff] }
  0xde   :  { %600 = vmatpush.msrb.mxu0 %v2870_v3  ;;  %620 = vmatpush.msrb.mxu1 %v2871_v60  ;;  %v26_v3 = vld [vmem:[%s2706_s0 + $0x18] sm:$0xff]  ;;  %v2876_v60 = vld [vmem:[#allocation27_spill] sm:$0xff] }
  0xdf   :  { %640 = vmatpush.msrb.mxu2 %v2872_v61  ;;  %660 = vmatpush.msrb.mxu3 %v2873_v62  ;;  %v127_v49 = vadd.f32 %v2876_v60, %v85_v59  ;;  %v2877_v61 = vld [vmem:[#allocation28_spill] sm:$0xff] }
  0xe0   :  { %44 = vperm.xlu1 %1178, %v25_v45   ;;  %v128_v56 = vadd.f32 %v2877_v61, %v86_v55  ;;  %v87_v45 = vmul.f32 %v2878_v54, %v40_v63  ;;  %v130_v55 = vadd.f32 %v1912_v46, %v88_v44 }
  0xe2   :  { %v129_v59 = vadd.f32 %v1909_v47, %v87_v45 }
  0xe8   :  { %49 = vperm.xlu1 %1178, %v26_v3  }
  0xf0   :  { %69 = vperm.xlu1 %1178, %v30_v50  }
 0x13b   :  { %v384_v62 = vpop.f32.mrf.mxu0  ;;  %v404_v51 = vpop.f32.mrf.mxu1 }
 0x13c   :  { %v447_v52 = vadd.f32 %v384_v62, %v127_v49  ;;  %v448_v58 = vadd.f32 %v404_v51, %v128_v56 }
 0x13e   :  { %v451_v48 = vmul.f32 0.5, %v447_v52  ;;  %v455_v43 = vmul.f32 0.5, %v448_v58 }
 0x140   :  { %1191 = vtanh.f32 %v451_v48 }
 0x141   :  { %1193 = vtanh.f32 %v455_v43 }
 0x142   :  { %v424_v3 = vpop.f32.mrf.mxu2  ;;  %v444_v62 = vpop.f32.mrf.mxu3 }
 0x143   :  { %v449_v51 = vadd.f32 %v424_v3, %v129_v59  ;;  %v450_v56 = vadd.f32 %v444_v62, %v130_v55 }
 0x145   :  { %1195 = vtanh.f32 %v449_v51  ;;  %v460_v49 = vmul.f32 0.5, %v450_v56 }
 0x146   :  { %v1192_v63 = vpop.eup %1191 }
 0x147   :  { %v1194_v53 = vpop.eup %1193  ;;  %v453_v54 = vmul.f32 0.5, %v1192_v63  ;;  %1197 = vtanh.f32 %v460_v49 }
 0x148   :  { %v457_v61 = vmul.f32 0.5, %v1194_v53 }
 0x149   :  { %v454_v52 = vadd.f32 0.5, %v453_v54 }
 0x14a   :  { %v458_v58 = vadd.f32 0.5, %v457_v61 }
 0x14b   :  { %v1196_v48 = vpop.eup %1195 }
 0x14c   :  { %v464_v43 = vmul.f32 %v458_v58, %v1916_v57  ;;  %v465_v50 = vmul.f32 %v1196_v48, %v454_v52  ;;  %v2907_v57 = vld [vmem:[#allocation31_spill] sm:$0xff] }
 0x14d   :  { %v1198_v45 = vpop.eup %1197 }
 0x14e   :  { %v2001_v47 = vadd.f32 %v465_v50, %v464_v43  ;;  %v462_v44 = vmul.f32 0.5, %v1198_v45 }
 0x150   :  { %1199 = vtanh.f32 %v2001_v47  ;;  %v463_v59 = vadd.f32 0.5, %v462_v44 }
 0x156   :  { %v1200_v55 = vpop.eup %1199 }
 0x157   :  { %v468_v3 = vmul.f32 %v1200_v55, %v463_v59 }
 0x159   :  { %492 = vmatmul.f32.vlgmr.msra.gmra.mxu0 %v468_v3  ;;  %512 = vmatmul.f32.vlgmr.msra.gmra.mxu1 %v468_v3 }
 0x15a   :  { %532 = vmatmul.f32.vlgmr.msra.gmra.mxu2 %v468_v3  ;;  %552 = vmatmul.f32.vlgmr.msra.gmra.mxu3 %v468_v3 }
 0x15b   :  { %694 = vmatpush.msra.mxu0 %v1365_v0  ;;  %714 = vmatpush.msra.mxu1 %v1370_v1  ;;  %v2880_v0 = vld [vmem:[#allocation3_spill] sm:$0xff]  ;;  %v2881_v1 = vld [vmem:[#allocation4_spill] sm:$0xff] }
 0x15c   :  { %734 = vmatpush.msra.mxu2 %v1375_v2  ;;  %754 = vmatpush.msra.mxu3 %v1384_v4  ;;  %v2882_v2 = vld [vmem:[#allocation5_spill] sm:$0xff]  ;;  %v2883_v4 = vld [vmem:[#allocation6_spill] sm:$0xff] }
 0x15d   :  { %695 = vmatpush.msra.mxu0 %v1389_v5  ;;  %715 = vmatpush.msra.mxu1 %v1394_v6  ;;  %v2884_v5 = vld [vmem:[#allocation7_spill] sm:$0xff]  ;;  %v2885_v6 = vld [vmem:[#allocation8_spill] sm:$0xff] }
 0x15e   :  { %735 = vmatpush.msra.mxu2 %v1401_v7  ;;  %755 = vmatpush.msra.mxu3 %v1406_v8  ;;  %v2886_v7 = vld [vmem:[#allocation9_spill] sm:$0xff]  ;;  %v2887_v8 = vld [vmem:[#allocation10_spill] sm:$0xff] }
 0x15f   :  { %696 = vmatpush.msra.mxu0 %v1411_v9  ;;  %716 = vmatpush.msra.mxu1 %v1418_v10  ;;  %v2888_v9 = vld [vmem:[#allocation11_spill] sm:$0xff]  ;;  %v2889_v10 = vld [vmem:[#allocation12_spill] sm:$0xff] }
 0x160   :  { %736 = vmatpush.msra.mxu2 %v1423_v11  ;;  %756 = vmatpush.msra.mxu3 %v1428_v12  ;;  %v2890_v11 = vld [vmem:[#allocation13_spill] sm:$0xff]  ;;  %v2891_v12 = vld [vmem:[#allocation14_spill] sm:$0xff] }
 0x161   :  { %697 = vmatpush.msra.mxu0 %v1435_v13  ;;  %717 = vmatpush.msra.mxu1 %v1440_v14  ;;  %v2892_v13 = vld [vmem:[#allocation15_spill] sm:$0xff]  ;;  %v2893_v14 = vld [vmem:[#allocation16_spill] sm:$0xff] }
 0x162   :  { %737 = vmatpush.msra.mxu2 %v1447_v15  ;;  %757 = vmatpush.msra.mxu3 %v1452_v16  ;;  %v2894_v15 = vld [vmem:[#allocation17_spill] sm:$0xff]  ;;  %v2895_v16 = vld [vmem:[#allocation18_spill] sm:$0xff] }
 0x163   :  { %698 = vmatpush.msra.mxu0 %v1459_v17  ;;  %718 = vmatpush.msra.mxu1 %v1464_v18  ;;  %v2896_v17 = vld [vmem:[#allocation19_spill] sm:$0xff]  ;;  %v2897_v18 = vld [vmem:[#allocation20_spill] sm:$0xff] }
 0x164   :  { %738 = vmatpush.msra.mxu2 %v1471_v19  ;;  %758 = vmatpush.msra.mxu3 %v1476_v20  ;;  %v2898_v19 = vld [vmem:[#allocation21_spill] sm:$0xff]  ;;  %v2899_v20 = vld [vmem:[#allocation22_spill] sm:$0xff] }
 0x165   :  { %699 = vmatpush.msra.mxu0 %v1483_v21  ;;  %719 = vmatpush.msra.mxu1 %v1488_v22  ;;  %v2900_v21 = vld [vmem:[#allocation23_spill] sm:$0xff]  ;;  %v2901_v22 = vld [vmem:[#allocation24_spill] sm:$0xff] }
 0x166   :  { %739 = vmatpush.msra.mxu2 %v1495_v23  ;;  %759 = vmatpush.msra.mxu3 %v1500_v24  ;;  %v45_v23 = vpop.permute.xlu1 %44  ;;  %v2902_v24 = vld [vmem:[#allocation25_spill] sm:$0xff] }
 0x167   :  { %700 = vmatpush.msra.mxu0 %v1507_v25  ;;  %720 = vmatpush.msra.mxu1 %v1512_v26  ;;  %v89_v25 = vmul.f32 %v2902_v24, %v45_v23  ;;  %v2903_v26 = vld [vmem:[#allocation26_spill] sm:$0xff] }
 0x168   :  { %740 = vmatpush.msra.mxu2 %v1519_v27  ;;  %760 = vmatpush.msra.mxu3 %v1524_v28  ;;  %v90_v27 = vmul.f32 %v2903_v26, %v45_v23 }
 0x169   :  { %701 = vmatpush.msra.mxu0 %v1531_v29  ;;  %721 = vmatpush.msra.mxu1 %v1536_v30  ;;  %v131_v28 = vadd.f32 %v2876_v60, %v89_v25  ;;  %v2904_v29 = vld [vmem:[#allocation28_spill] sm:$0xff] }
 0x16a   :  { %741 = vmatpush.msra.mxu2 %v1543_v31  ;;  %761 = vmatpush.msra.mxu3 %v1548_v32  ;;  %v132_v30 = vadd.f32 %v2904_v29, %v90_v27 }
 0x16b   :  { %702 = vmatpush.msra.mxu0 %v1555_v33  ;;  %722 = vmatpush.msra.mxu1 %v1560_v34 }
 0x16c   :  { %742 = vmatpush.msra.mxu2 %v1567_v35  ;;  %762 = vmatpush.msra.mxu3 %v1572_v36  ;;  %v2905_v35 = vld [vmem:[#allocation29_spill] sm:$0xff] }
 0x16d   :  { %703 = vmatpush.msra.mxu0 %v1579_v37  ;;  %723 = vmatpush.msra.mxu1 %v1584_v38  ;;  %v91_v36 = vmul.f32 %v2905_v35, %v45_v23  ;;  %v2906_v37 = vld [vmem:[#allocation30_spill] sm:$0xff] }
 0x16e   :  { %743 = vmatpush.msra.mxu2 %v1591_v39  ;;  %763 = vmatpush.msra.mxu3 %v1596_v40  ;;  %v92_v38 = vmul.f32 %v2906_v37, %v45_v23 }
 0x16f   :  { %704 = vmatpush.msra.mxu0 %v1603_v41  ;;  %724 = vmatpush.msra.mxu1 %v1608_v42  ;;  %v133_v53 = vadd.f32 %v2907_v57, %v91_v36  ;;  %v2119_v36 = vld [vmem:[%s2705_s2 + $0x1d0] sm:$0xff] }
 0x170   :  { %744 = vmatpush.msra.mxu2 %v2880_v0  ;;  %764 = vmatpush.msra.mxu3 %v2881_v1  ;;  %v134_v54 = vadd.f32 %v1912_v46, %v92_v38  ;;  %v2125_v38 = vld [vmem:[%s2705_s2 + $0x1d8] sm:$0xff] }
 0x171   :  { %705 = vmatpush.msra.mxu0 %v2882_v2  ;;  %725 = vmatpush.msra.mxu1 %v2883_v4 }
 0x172   :  { %745 = vmatpush.msra.mxu2 %v2884_v5  ;;  %765 = vmatpush.msra.mxu3 %v2885_v6 }
 0x173   :  { %706 = vmatpush.msra.mxu0 %v2886_v7  ;;  %726 = vmatpush.msra.mxu1 %v2887_v8 }
 0x174   :  { %746 = vmatpush.msra.mxu2 %v2888_v9  ;;  %766 = vmatpush.msra.mxu3 %v2889_v10 }
 0x175   :  { %707 = vmatpush.msra.mxu0 %v2890_v11  ;;  %727 = vmatpush.msra.mxu1 %v2891_v12 }
 0x176   :  { %747 = vmatpush.msra.mxu2 %v2892_v13  ;;  %767 = vmatpush.msra.mxu3 %v2893_v14 }
 0x177   :  { %708 = vmatpush.msra.mxu0 %v2894_v15  ;;  %728 = vmatpush.msra.mxu1 %v2895_v16 }
 0x178   :  { %748 = vmatpush.msra.mxu2 %v2896_v17  ;;  %768 = vmatpush.msra.mxu3 %v2897_v18 }
 0x179   :  { %709 = vmatpush.msra.mxu0 %v2898_v19  ;;  %729 = vmatpush.msra.mxu1 %v2899_v20 }
 0x17a   :  { %749 = vmatpush.msra.mxu2 %v2900_v21  ;;  %769 = vmatpush.msra.mxu3 %v2901_v22 }
 0x1d6   :  { %v493_v31 = vpop.f32.mrf.mxu0  ;;  %v513_v32 = vpop.f32.mrf.mxu1 }
 0x1d7   :  { %v556_v33 = vadd.f32 %v493_v31, %v131_v28  ;;  %v557_v34 = vadd.f32 %v513_v32, %v132_v30  ;;  %v2083_v30 = vld [vmem:[%s2705_s2 + $0x1e0] sm:$0xff]  ;;  %v2095_v31 = vld [vmem:[%s2705_s2 + $0x1f0] sm:$0xff]  ;;  %v2101_v32 = vld [vmem:[%s2705_s2 + $0x1f8] sm:$0xff] }
 0x1d9   :  { %v560_v39 = vmul.f32 0.5, %v556_v33  ;;  %v564_v40 = vmul.f32 0.5, %v557_v34  ;;  %v2107_v33 = vld [vmem:[%s2705_s2 + $0x1c0] sm:$0xff]  ;;  %v2113_v34 = vld [vmem:[%s2705_s2 + $0x1c8] sm:$0xff] }
 0x1db   :  { %1201 = vtanh.f32 %v560_v39  ;;  %v2131_v39 = vld [vmem:[%s2705_s2 + $0x1a0] sm:$0xff] }
 0x1dc   :  { %1203 = vtanh.f32 %v564_v40  ;;  %v2137_v40 = vld [vmem:[%s2705_s2 + $0x1a8] sm:$0xff] }
 0x1dd   :  { %v533_v61 = vpop.f32.mrf.mxu2  ;;  %v553_v62 = vpop.f32.mrf.mxu3 }
 0x1de   :  { %v558_v51 = vadd.f32 %v533_v61, %v133_v53  ;;  %v559_v56 = vadd.f32 %v553_v62, %v134_v54  ;;  %v2143_v53 = vld [vmem:[%s2705_s2 + $0x1b0] sm:$0xff]  ;;  %v2149_v54 = vld [vmem:[%s2705_s2 + $0x1b8] sm:$0xff]  ;;  %v2155_v61 = vld [vmem:[%s2705_s2 + $0x180] sm:$0xff] }
 0x1df   :  { %v2161_v62 = vld [vmem:[%s2705_s2 + $0x188] sm:$0xff] }
 0x1e0   :  { %1205 = vtanh.f32 %v558_v51  ;;  %v569_v49 = vmul.f32 0.5, %v559_v56  ;;  %v2167_v51 = vld [vmem:[%s2705_s2 + $0x190] sm:$0xff]  ;;  %v2173_v56 = vld [vmem:[%s2705_s2 + $0x198] sm:$0xff] }
 0x1e1   :  { %v1202_v63 = vpop.eup %1201 }
 0x1e2   :  { %v1204_v52 = vpop.eup %1203  ;;  %v562_v58 = vmul.f32 0.5, %v1202_v63  ;;  %1207 = vtanh.f32 %v569_v49  ;;  %v2179_v49 = vld [vmem:[%s2705_s2 + $0x160] sm:$0xff]  ;;  %v2185_v63 = vld [vmem:[%s2705_s2 + $0x168] sm:$0xff] }
 0x1e3   :  { %v566_v48 = vmul.f32 0.5, %v1204_v52  ;;  %v2191_v52 = vld [vmem:[%s2705_s2 + $0x170] sm:$0xff] }
 0x1e4   :  { %v563_v43 = vadd.f32 0.5, %v562_v58  ;;  %v2197_v58 = vld [vmem:[%s2705_s2 + $0x178] sm:$0xff] }
 0x1e5   :  { %v567_v50 = vadd.f32 0.5, %v566_v48  ;;  %v2203_v48 = vld [vmem:[%s2705_s2 + $0x140] sm:$0xff] }
 0x1e6   :  { %v1206_v45 = vpop.eup %1205 }
 0x1e7   :  { %v573_v44 = vmul.f32 %v567_v50, %v2001_v47  ;;  %v574_v59 = vmul.f32 %v1206_v45, %v563_v43  ;;  %v2089_v47 = vld [vmem:[%s2705_s2 + $0x1e8] sm:$0xff]  ;;  %v2215_v50 = vld [vmem:[%s2705_s2 + $0x150] sm:$0xff]  ;;  %v2221_v45 = vld [vmem:[%s2705_s2 + $0x158] sm:$0xff] }
 0x1e8   :  { %v1208_v55 = vpop.eup %1207  ;;  %v2209_v43 = vld [vmem:[%s2705_s2 + $0x148] sm:$0xff] }
 0x1e9   :  { %v2077_v3 = vadd.f32 %v574_v59, %v573_v44  ;;  %v571_v23 = vmul.f32 0.5, %v1208_v55  ;;  %v2227_v44 = vld [vmem:[%s2705_s2 + $0x120] sm:$0xff]  ;;  %v2233_v59 = vld [vmem:[%s2705_s2 + $0x128] sm:$0xff]  ;;  %v2239_v55 = vld [vmem:[%s2705_s2 + $0x130] sm:$0xff] }
 0x1eb   :  { %1209 = vtanh.f32 %v2077_v3  ;;  %v572_v25 = vadd.f32 0.5, %v571_v23  ;;  %v2245_v23 = vld [vmem:[%s2705_s2 + $0x138] sm:$0xff] }
 0x1ec   :  { %2908 = vst [vmem:[#allocation3_spill] sm:$0xff] %v2245_v23 }
 0x1f1   :  { %v1210_v27 = vpop.eup %1209 }
 0x1f2   :  { %v577_v28 = vmul.f32 %v1210_v27, %v572_v25  ;;  %v2251_v25 = vld [vmem:[%s2705_s2 + $0x100] sm:$0xff]  ;;  %v2257_v27 = vld [vmem:[%s2705_s2 + $0x108] sm:$0xff] }
 0x1f3   :  { %2909 = vst [vmem:[#allocation4_spill] sm:$0xff] %v2251_v25 }
 0x1f4   :  { %601 = vmatmul.f32.vlgmr.msrb.gmra.mxu0 %v577_v28  ;;  %621 = vmatmul.f32.vlgmr.msrb.gmra.mxu1 %v577_v28  ;;  %2910 = vst [vmem:[#allocation5_spill] sm:$0xff] %v2257_v27 }
 0x1f5   :  { %641 = vmatmul.f32.vlgmr.msrb.gmra.mxu2 %v577_v28  ;;  %661 = vmatmul.f32.vlgmr.msrb.gmra.mxu3 %v577_v28  ;;  %v2263_v28 = vld [vmem:[%s2705_s2 + $0x110] sm:$0xff] }
 0x1f6   :  { %803 = vmatpush.msrb.mxu0 %v2083_v30  ;;  %823 = vmatpush.msrb.mxu1 %v2089_v47  ;;  %2911 = vst [vmem:[#allocation6_spill] sm:$0xff] %v2263_v28 }
 0x1f7   :  { %843 = vmatpush.msrb.mxu2 %v2095_v31  ;;  %863 = vmatpush.msrb.mxu3 %v2101_v32 }
 0x1f8   :  { %804 = vmatpush.msrb.mxu0 %v2107_v33  ;;  %824 = vmatpush.msrb.mxu1 %v2113_v34 }
 0x1f9   :  { %844 = vmatpush.msrb.mxu2 %v2119_v36  ;;  %864 = vmatpush.msrb.mxu3 %v2125_v38 }
 0x1fa   :  { %805 = vmatpush.msrb.mxu0 %v2131_v39  ;;  %825 = vmatpush.msrb.mxu1 %v2137_v40 }
 0x1fb   :  { %845 = vmatpush.msrb.mxu2 %v2143_v53  ;;  %865 = vmatpush.msrb.mxu3 %v2149_v54 }
 0x1fc   :  { %806 = vmatpush.msrb.mxu0 %v2155_v61  ;;  %826 = vmatpush.msrb.mxu1 %v2161_v62 }
 0x1fd   :  { %846 = vmatpush.msrb.mxu2 %v2167_v51  ;;  %866 = vmatpush.msrb.mxu3 %v2173_v56 }
 0x1fe   :  { %807 = vmatpush.msrb.mxu0 %v2179_v49  ;;  %827 = vmatpush.msrb.mxu1 %v2185_v63 }
 0x1ff   :  { %847 = vmatpush.msrb.mxu2 %v2191_v52  ;;  %867 = vmatpush.msrb.mxu3 %v2197_v58 }
 0x200   :  { %808 = vmatpush.msrb.mxu0 %v2203_v48  ;;  %828 = vmatpush.msrb.mxu1 %v2209_v43 }
 0x201   :  { %848 = vmatpush.msrb.mxu2 %v2215_v50  ;;  %868 = vmatpush.msrb.mxu3 %v2221_v45 }
 0x202   :  { %809 = vmatpush.msrb.mxu0 %v2227_v44  ;;  %829 = vmatpush.msrb.mxu1 %v2233_v59 }
 0x203   :  { %849 = vmatpush.msrb.mxu2 %v2239_v55  ;;  %869 = vmatpush.msrb.mxu3 %v2245_v23  ;;  %v2269_v23 = vld [vmem:[%s2705_s2 + $0x118] sm:$0xff] }
 0x204   :  { %810 = vmatpush.msrb.mxu0 %v2251_v25  ;;  %830 = vmatpush.msrb.mxu1 %v2257_v27  ;;  %2912 = vst [vmem:[#allocation7_spill] sm:$0xff] %v2269_v23  ;;  %v2275_v25 = vld [vmem:[%s2705_s2 + $0xe0] sm:$0xff]  ;;  %v2281_v27 = vld [vmem:[%s2705_s2 + $0xe8] sm:$0xff] }
 0x205   :  { %850 = vmatpush.msrb.mxu2 %v2263_v28  ;;  %870 = vmatpush.msrb.mxu3 %v2269_v23  ;;  %2913 = vst [vmem:[#allocation8_spill] sm:$0xff] %v2275_v25  ;;  %v2287_v28 = vld [vmem:[%s2705_s2 + $0xf0] sm:$0xff]  ;;  %v2293_v23 = vld [vmem:[%s2705_s2 + $0xf8] sm:$0xff] }
 0x206   :  { %811 = vmatpush.msrb.mxu0 %v2275_v25  ;;  %2914 = vst [vmem:[#allocation9_spill] sm:$0xff] %v2281_v27  ;;  %831 = vmatpush.msrb.mxu1 %v2281_v27  ;;  %v2299_v25 = vld [vmem:[%s2705_s2 + $0xc0] sm:$0xff]  ;;  %v2305_v27 = vld [vmem:[%s2705_s2 + $0xc8] sm:$0xff] }
 0x207   :  { %2915 = vst [vmem:[#allocation10_spill] sm:$0xff] %v2287_v28  ;;  %851 = vmatpush.msrb.mxu2 %v2287_v28  ;;  %871 = vmatpush.msrb.mxu3 %v2293_v23  ;;  %v2311_v28 = vld [vmem:[%s2705_s2 + $0xd0] sm:$0xff] }
 0x208   :  { %2916 = vst [vmem:[#allocation11_spill] sm:$0xff] %v2293_v23  ;;  %812 = vmatpush.msrb.mxu0 %v2299_v25  ;;  %832 = vmatpush.msrb.mxu1 %v2305_v27  ;;  %v2317_v23 = vld [vmem:[%s2705_s2 + $0xd8] sm:$0xff] }
 0x209   :  { %852 = vmatpush.msrb.mxu2 %v2311_v28  ;;  %872 = vmatpush.msrb.mxu3 %v2317_v23 }
 0x20a   :  { %813 = vmatpush.msrb.mxu0 %v1603_v41  ;;  %833 = vmatpush.msrb.mxu1 %v1608_v42  ;;  %v50_v41 = vpop.permute.xlu1 %49 }
 0x20b   :  { %853 = vmatpush.msrb.mxu2 %v2880_v0  ;;  %873 = vmatpush.msrb.mxu3 %v2881_v1  ;;  %v93_v42 = vmul.f32 %v2902_v24, %v50_v41  ;;  %v94_v0 = vmul.f32 %v2903_v26, %v50_v41 }
 0x20c   :  { %814 = vmatpush.msrb.mxu0 %v2882_v2  ;;  %834 = vmatpush.msrb.mxu1 %v2883_v4  ;;  %v27_v4 = vld [vmem:[%s2706_s0 + $0x20] sm:$0xff] }
 0x20d   :  { %854 = vmatpush.msrb.mxu2 %v2884_v5  ;;  %874 = vmatpush.msrb.mxu3 %v2885_v6  ;;  %v135_v1 = vadd.f32 %v2876_v60, %v93_v42  ;;  %v136_v2 = vadd.f32 %v2904_v29, %v94_v0 }
 0x20e   :  { %815 = vmatpush.msrb.mxu0 %v2886_v7  ;;  %835 = vmatpush.msrb.mxu1 %v2887_v8 }
 0x20f   :  { %855 = vmatpush.msrb.mxu2 %v2888_v9  ;;  %875 = vmatpush.msrb.mxu3 %v2889_v10  ;;  %v95_v9 = vmul.f32 %v2905_v35, %v50_v41  ;;  %v96_v10 = vmul.f32 %v2906_v37, %v50_v41 }
 0x210   :  { %816 = vmatpush.msrb.mxu0 %v2890_v11  ;;  %836 = vmatpush.msrb.mxu1 %v2891_v12 }
 0x211   :  { %856 = vmatpush.msrb.mxu2 %v2892_v13  ;;  %876 = vmatpush.msrb.mxu3 %v2893_v14  ;;  %v28_v13 = vld [vmem:[%s2706_s0 + $0x28] sm:$0xff]  ;;  %v137_v14 = vadd.f32 %v2907_v57, %v95_v9 }
 0x212   :  { %817 = vmatpush.msrb.mxu0 %v2894_v15  ;;  %837 = vmatpush.msrb.mxu1 %v2895_v16  ;;  %v138_v15 = vadd.f32 %v1912_v46, %v96_v10 }
 0x213   :  { %857 = vmatpush.msrb.mxu2 %v2896_v17  ;;  %877 = vmatpush.msrb.mxu3 %v2897_v18 }
 0x214   :  { %818 = vmatpush.msrb.mxu0 %v2898_v19  ;;  %838 = vmatpush.msrb.mxu1 %v2899_v20 }
 0x215   :  { %858 = vmatpush.msrb.mxu2 %v2900_v21  ;;  %878 = vmatpush.msrb.mxu3 %v2901_v22 }
 0x216   :  { %54 = vperm.xlu2 %1179, %v27_v4  }
 0x21e   :  { %59 = vperm.xlu2 %1179, %v28_v13   ;;  %v2919_v13 = vld [vmem:[#allocation5_spill] sm:$0xff] }
 0x271   :  { %v602_v5 = vpop.f32.mrf.mxu0  ;;  %v622_v6 = vpop.f32.mrf.mxu1 }
 0x272   :  { %v665_v7 = vadd.f32 %v602_v5, %v135_v1  ;;  %v666_v8 = vadd.f32 %v622_v6, %v136_v2 }
 0x274   :  { %v669_v11 = vmul.f32 0.5, %v665_v7  ;;  %v673_v12 = vmul.f32 0.5, %v666_v8 }
 0x276   :  { %1211 = vtanh.f32 %v669_v11 }
 0x277   :  { %1213 = vtanh.f32 %v673_v12  ;;  %v2918_v12 = vld [vmem:[#allocation4_spill] sm:$0xff] }
 0x278   :  { %v642_v16 = vpop.f32.mrf.mxu2  ;;  %v662_v17 = vpop.f32.mrf.mxu3 }
 0x279   :  { %v667_v18 = vadd.f32 %v642_v16, %v137_v14  ;;  %v668_v19 = vadd.f32 %v662_v17, %v138_v15  ;;  %v2920_v14 = vld [vmem:[#allocation6_spill] sm:$0xff]  ;;  %v2921_v15 = vld [vmem:[#allocation7_spill] sm:$0xff]  ;;  %v2922_v16 = vld [vmem:[#allocation8_spill] sm:$0xff] }
 0x27a   :  { %v2923_v17 = vld [vmem:[#allocation9_spill] sm:$0xff] }
 0x27b   :  { %1215 = vtanh.f32 %v667_v18  ;;  %v678_v20 = vmul.f32 0.5, %v668_v19  ;;  %v2924_v18 = vld [vmem:[#allocation10_spill] sm:$0xff]  ;;  %v2925_v19 = vld [vmem:[#allocation11_spill] sm:$0xff] }
 0x27c   :  { %v1212_v21 = vpop.eup %1211 }
 0x27d   :  { %v1214_v22 = vpop.eup %1213  ;;  %v671_v41 = vmul.f32 0.5, %v1212_v21  ;;  %1217 = vtanh.f32 %v678_v20  ;;  %v2405_v20 = vld [vmem:[%s2705_s2 + $0xa0] sm:$0xff]  ;;  %v2411_v21 = vld [vmem:[%s2705_s2 + $0xa8] sm:$0xff] }
 0x27e   :  { %v675_v42 = vmul.f32 0.5, %v1214_v22  ;;  %2926 = vst [vmem:[#allocation12_spill] sm:$0xff] %v2411_v21  ;;  %v2417_v22 = vld [vmem:[%s2705_s2 + $0xb0] sm:$0xff] }
 0x27f   :  { %v672_v0 = vadd.f32 0.5, %v671_v41  ;;  %2927 = vst [vmem:[#allocation13_spill] sm:$0xff] %v2417_v22  ;;  %v2423_v41 = vld [vmem:[%s2705_s2 + $0xb8] sm:$0xff] }
 0x280   :  { %v676_v1 = vadd.f32 0.5, %v675_v42  ;;  %2928 = vst [vmem:[#allocation14_spill] sm:$0xff] %v2423_v41  ;;  %v2429_v42 = vld [vmem:[%s2705_s2 + $0x80] sm:$0xff] }
 0x281   :  { %v1216_v2 = vpop.eup %1215  ;;  %2929 = vst [vmem:[#allocation15_spill] sm:$0xff] %v2429_v42 }
 0x282   :  { %v682_v4 = vmul.f32 %v676_v1, %v2077_v3  ;;  %v683_v5 = vmul.f32 %v1216_v2, %v672_v0  ;;  %v2917_v3 = vld [vmem:[#allocation3_spill] sm:$0xff]  ;;  %v2435_v0 = vld [vmem:[%s2705_s2 + $0x88] sm:$0xff]  ;;  %v2441_v1 = vld [vmem:[%s2705_s2 + $0x90] sm:$0xff] }
 0x283   :  { %v1218_v6 = vpop.eup %1217  ;;  %2930 = vst [vmem:[#allocation16_spill] sm:$0xff] %v2435_v0  ;;  %v2447_v2 = vld [vmem:[%s2705_s2 + $0x98] sm:$0xff] }
 0x284   :  { %v2359_v7 = vadd.f32 %v683_v5, %v682_v4  ;;  %v680_v8 = vmul.f32 0.5, %v1218_v6  ;;  %2931 = vst [vmem:[#allocation17_spill] sm:$0xff] %v2441_v1  ;;  %v2453_v4 = vld [vmem:[%s2705_s2 + $0x60] sm:$0xff]  ;;  %v2459_v5 = vld [vmem:[%s2705_s2 + $0x68] sm:$0xff]  ;;  %v2465_v6 = vld [vmem:[%s2705_s2 + $0x70] sm:$0xff] }
 0x285   :  { %2932 = vst [vmem:[#allocation18_spill] sm:$0xff] %v2447_v2 }
 0x286   :  { %1219 = vtanh.f32 %v2359_v7  ;;  %v681_v9 = vadd.f32 0.5, %v680_v8  ;;  %2933 = vst [vmem:[#allocation19_spill] sm:$0xff] %v2453_v4  ;;  %v2471_v8 = vld [vmem:[%s2705_s2 + $0x78] sm:$0xff] }
 0x287   :  { %2934 = vst [vmem:[#allocation20_spill] sm:$0xff] %v2459_v5 }
 0x288   :  { %2935 = vst [vmem:[#allocation21_spill] sm:$0xff] %v2465_v6 }
 0x289   :  { %2936 = vst [vmem:[#allocation22_spill] sm:$0xff] %v2471_v8 }
 0x28c   :  { %v1220_v10 = vpop.eup %1219 }
 0x28d   :  { %v686_v11 = vmul.f32 %v1220_v10, %v681_v9  ;;  %v2477_v9 = vld [vmem:[%s2705_s2 + $0x40] sm:$0xff]  ;;  %v2483_v10 = vld [vmem:[%s2705_s2 + $0x48] sm:$0xff] }
 0x28e   :  { %2937 = vst [vmem:[#allocation23_spill] sm:$0xff] %v2477_v9 }
 0x28f   :  { %710 = vmatmul.f32.vlgmr.msra.gmra.mxu0 %v686_v11  ;;  %730 = vmatmul.f32.vlgmr.msra.gmra.mxu1 %v686_v11  ;;  %2938 = vst [vmem:[#allocation24_spill] sm:$0xff] %v2483_v10 }
 0x290   :  { %750 = vmatmul.f32.vlgmr.msra.gmra.mxu2 %v686_v11  ;;  %770 = vmatmul.f32.vlgmr.msra.gmra.mxu3 %v686_v11  ;;  %v2489_v11 = vld [vmem:[%s2705_s2 + $0x50] sm:$0xff] }
 0x291   :  { %912 = vmatpush.msra.mxu0 %v2083_v30  ;;  %932 = vmatpush.msra.mxu1 %v2089_v47  ;;  %2939 = vst [vmem:[#allocation29_spill] sm:$0xff] %v2489_v11 }
 0x292   :  { %952 = vmatpush.msra.mxu2 %v2095_v31  ;;  %972 = vmatpush.msra.mxu3 %v2101_v32 }
 0x293   :  { %913 = vmatpush.msra.mxu0 %v2107_v33  ;;  %933 = vmatpush.msra.mxu1 %v2113_v34 }
 0x294   :  { %953 = vmatpush.msra.mxu2 %v2119_v36  ;;  %973 = vmatpush.msra.mxu3 %v2125_v38 }
 0x295   :  { %914 = vmatpush.msra.mxu0 %v2131_v39  ;;  %934 = vmatpush.msra.mxu1 %v2137_v40 }
 0x296   :  { %954 = vmatpush.msra.mxu2 %v2143_v53  ;;  %974 = vmatpush.msra.mxu3 %v2149_v54 }
 0x297   :  { %915 = vmatpush.msra.mxu0 %v2155_v61  ;;  %935 = vmatpush.msra.mxu1 %v2161_v62 }
 0x298   :  { %955 = vmatpush.msra.mxu2 %v2167_v51  ;;  %975 = vmatpush.msra.mxu3 %v2173_v56 }
 0x299   :  { %916 = vmatpush.msra.mxu0 %v2179_v49  ;;  %936 = vmatpush.msra.mxu1 %v2185_v63 }
 0x29a   :  { %956 = vmatpush.msra.mxu2 %v2191_v52  ;;  %976 = vmatpush.msra.mxu3 %v2197_v58 }
 0x29b   :  { %917 = vmatpush.msra.mxu0 %v2203_v48  ;;  %937 = vmatpush.msra.mxu1 %v2209_v43 }
 0x29c   :  { %957 = vmatpush.msra.mxu2 %v2215_v50  ;;  %977 = vmatpush.msra.mxu3 %v2221_v45 }
 0x29d   :  { %918 = vmatpush.msra.mxu0 %v2227_v44  ;;  %938 = vmatpush.msra.mxu1 %v2233_v59 }
 0x29e   :  { %958 = vmatpush.msra.mxu2 %v2239_v55  ;;  %978 = vmatpush.msra.mxu3 %v2917_v3 }
 0x29f   :  { %919 = vmatpush.msra.mxu0 %v2918_v12  ;;  %939 = vmatpush.msra.mxu1 %v2919_v13 }
 0x2a0   :  { %959 = vmatpush.msra.mxu2 %v2920_v14  ;;  %979 = vmatpush.msra.mxu3 %v2921_v15 }
 0x2a1   :  { %920 = vmatpush.msra.mxu0 %v2922_v16  ;;  %940 = vmatpush.msra.mxu1 %v2923_v17 }
 0x2a2   :  { %960 = vmatpush.msra.mxu2 %v2924_v18  ;;  %980 = vmatpush.msra.mxu3 %v2925_v19 }
 0x2a3   :  { %921 = vmatpush.msra.mxu0 %v2299_v25  ;;  %941 = vmatpush.msra.mxu1 %v2305_v27 }
 0x2a4   :  { %961 = vmatpush.msra.mxu2 %v2311_v28  ;;  %981 = vmatpush.msra.mxu3 %v2317_v23 }
 0x2a5   :  { %922 = vmatpush.msra.mxu0 %v2405_v20  ;;  %942 = vmatpush.msra.mxu1 %v2411_v21 }
 0x2a6   :  { %962 = vmatpush.msra.mxu2 %v2417_v22  ;;  %982 = vmatpush.msra.mxu3 %v2423_v41 }
 0x2a7   :  { %923 = vmatpush.msra.mxu0 %v2429_v42  ;;  %943 = vmatpush.msra.mxu1 %v2435_v0 }
 0x2a8   :  { %963 = vmatpush.msra.mxu2 %v2441_v1  ;;  %983 = vmatpush.msra.mxu3 %v2447_v2 }
 0x2a9   :  { %924 = vmatpush.msra.mxu0 %v2453_v4  ;;  %944 = vmatpush.msra.mxu1 %v2459_v5 }
 0x2aa   :  { %964 = vmatpush.msra.mxu2 %v2465_v6  ;;  %984 = vmatpush.msra.mxu3 %v2471_v8  ;;  %v2495_v8 = vld [vmem:[%s2705_s2 + $0x58] sm:$0xff] }
 0x2ab   :  { %925 = vmatpush.msra.mxu0 %v2477_v9  ;;  %945 = vmatpush.msra.mxu1 %v2483_v10  ;;  %2940 = vst [vmem:[#allocation30_spill] sm:$0xff] %v2495_v8  ;;  %v2501_v9 = vld [vmem:[%s2705_s2 + $0x20] sm:$0xff]  ;;  %v2507_v10 = vld [vmem:[%s2705_s2 + $0x28] sm:$0xff] }
 0x2ac   :  { %965 = vmatpush.msra.mxu2 %v2489_v11  ;;  %985 = vmatpush.msra.mxu3 %v2495_v8  ;;  %2941 = vst [vmem:[#allocation3_spill] sm:$0xff] %v2501_v9  ;;  %v2513_v11 = vld [vmem:[%s2705_s2 + $0x30] sm:$0xff]  ;;  %v2519_v8 = vld [vmem:[%s2705_s2 + $0x38] sm:$0xff] }
 0x2ad   :  { %926 = vmatpush.msra.mxu0 %v2501_v9  ;;  %2942 = vst [vmem:[#allocation4_spill] sm:$0xff] %v2507_v10  ;;  %946 = vmatpush.msra.mxu1 %v2507_v10  ;;  %v2525_v9 = vld [vmem:[%s2705_s2] sm:$0xff]  ;;  %v2531_v10 = vld [vmem:[%s2705_s2 + $0x8] sm:$0xff] }
 0x2ae   :  { %2943 = vst [vmem:[#allocation5_spill] sm:$0xff] %v2513_v11  ;;  %966 = vmatpush.msra.mxu2 %v2513_v11  ;;  %986 = vmatpush.msra.mxu3 %v2519_v8  ;;  %v2537_v11 = vld [vmem:[%s2705_s2 + $0x10] sm:$0xff] }
 0x2af   :  { %2944 = vst [vmem:[#allocation6_spill] sm:$0xff] %v2519_v8  ;;  %927 = vmatpush.msra.mxu0 %v2525_v9  ;;  %947 = vmatpush.msra.mxu1 %v2531_v10  ;;  %v2543_v8 = vld [vmem:[%s2705_s2 + $0x18] sm:$0xff] }
 0x2b0   :  { %2945 = vst [vmem:[#allocation7_spill] sm:$0xff] %v2525_v9  ;;  %967 = vmatpush.msra.mxu2 %v2537_v11  ;;  %987 = vmatpush.msra.mxu3 %v2543_v8  ;;  %v55_v9 = vpop.permute.xlu2 %54 }
 0x2b1   :  { %2946 = vst [vmem:[#allocation8_spill] sm:$0xff] %v2531_v10  ;;  %v97_v6 = vmul.f32 %v2902_v24, %v55_v9  ;;  %v98_v5 = vmul.f32 %v2903_v26, %v55_v9  ;;  %v99_v42 = vmul.f32 %v2905_v35, %v55_v9  ;;  %v100_v41 = vmul.f32 %v2906_v37, %v55_v9 }
 0x2b2   :  { %2947 = vst [vmem:[#allocation9_spill] sm:$0xff] %v2537_v11 }
 0x2b3   :  { %2948 = vst [vmem:[#allocation10_spill] sm:$0xff] %v2543_v8  ;;  %v139_v10 = vadd.f32 %v2876_v60, %v97_v6  ;;  %v140_v4 = vadd.f32 %v2904_v29, %v98_v5  ;;  %v141_v24 = vadd.f32 %v2907_v57, %v99_v42  ;;  %v142_v26 = vadd.f32 %v1912_v46, %v100_v41 }
 0x30c   :  { %v711_v2 = vpop.f32.mrf.mxu0  ;;  %v731_v1 = vpop.f32.mrf.mxu1 }
 0x30d   :  { %v774_v0 = vadd.f32 %v711_v2, %v139_v10  ;;  %v775_v11 = vadd.f32 %v731_v1, %v140_v4 }
 0x30f   :  { %v778_v22 = vmul.f32 0.5, %v774_v0  ;;  %v782_v21 = vmul.f32 0.5, %v775_v11 }
 0x311   :  { %1221 = vtanh.f32 %v778_v22 }
 0x312   :  { %1223 = vtanh.f32 %v782_v21 }
 0x313   :  { %v751_v8 = vpop.f32.mrf.mxu2  ;;  %v771_v6 = vpop.f32.mrf.mxu3 }
 0x314   :  { %v776_v60 = vadd.f32 %v751_v8, %v141_v24  ;;  %v777_v5 = vadd.f32 %v771_v6, %v142_v26 }
 0x316   :  { %1225 = vtanh.f32 %v776_v60  ;;  %v787_v29 = vmul.f32 0.5, %v777_v5 }
 0x317   :  { %v1222_v2 = vpop.eup %1221 }
 0x318   :  { %v1224_v1 = vpop.eup %1223  ;;  %v780_v4 = vmul.f32 0.5, %v1222_v2  ;;  %1227 = vtanh.f32 %v787_v29  ;;  %v2949_v29 = vld [vmem:[#allocation12_spill] sm:$0xff] }
 0x319   :  { %v784_v10 = vmul.f32 0.5, %v1224_v1 }
 0x31a   :  { %v781_v9 = vadd.f32 0.5, %v780_v4 }
 0x31b   :  { %v785_v0 = vadd.f32 0.5, %v784_v10 }
 0x31c   :  { %v1226_v11 = vpop.eup %1225 }
 0x31d   :  { %v791_v21 = vmul.f32 %v785_v0, %v2359_v7  ;;  %v792_v22 = vmul.f32 %v1226_v11, %v781_v9 }
 0x31e   :  { %v1228_v42 = vpop.eup %1227 }
 0x31f   :  { %v2555_v57 = vadd.f32 %v792_v22, %v791_v21  ;;  %v789_v24 = vmul.f32 0.5, %v1228_v42 }
 0x321   :  { %1229 = vtanh.f32 %v2555_v57  ;;  %v790_v26 = vadd.f32 0.5, %v789_v24 }
 0x327   :  { %v1230_v60 = vpop.eup %1229 }
 0x328   :  { %v795_v41 = vmul.f32 %v1230_v60, %v790_v26 }
 0x32a   :  { %819 = vmatmul.f32.vlgmr.msrb.gmra.mxu0 %v795_v41  ;;  %839 = vmatmul.f32.vlgmr.msrb.gmra.mxu1 %v795_v41 }
 0x32b   :  { %859 = vmatmul.f32.vlgmr.msrb.gmra.mxu2 %v795_v41  ;;  %879 = vmatmul.f32.vlgmr.msrb.gmra.mxu3 %v795_v41 }
 0x32c   :  { %1021 = vmatpush.msrb.mxu0 %v2083_v30  ;;  %1041 = vmatpush.msrb.mxu1 %v2089_v47  ;;  %v2950_v30 = vld [vmem:[#allocation13_spill] sm:$0xff]  ;;  %v2951_v47 = vld [vmem:[#allocation14_spill] sm:$0xff] }
 0x32d   :  { %1061 = vmatpush.msrb.mxu2 %v2095_v31  ;;  %1081 = vmatpush.msrb.mxu3 %v2101_v32  ;;  %v2952_v31 = vld [vmem:[#allocation15_spill] sm:$0xff]  ;;  %v2953_v32 = vld [vmem:[#allocation16_spill] sm:$0xff] }
 0x32e   :  { %1022 = vmatpush.msrb.mxu0 %v2107_v33  ;;  %1042 = vmatpush.msrb.mxu1 %v2113_v34  ;;  %v2954_v33 = vld [vmem:[#allocation17_spill] sm:$0xff]  ;;  %v2955_v34 = vld [vmem:[#allocation18_spill] sm:$0xff] }
 0x32f   :  { %1062 = vmatpush.msrb.mxu2 %v2119_v36  ;;  %1082 = vmatpush.msrb.mxu3 %v2125_v38  ;;  %v2956_v36 = vld [vmem:[#allocation19_spill] sm:$0xff]  ;;  %v2957_v38 = vld [vmem:[#allocation20_spill] sm:$0xff] }
 0x330   :  { %1023 = vmatpush.msrb.mxu0 %v2131_v39  ;;  %1043 = vmatpush.msrb.mxu1 %v2137_v40  ;;  %v2958_v39 = vld [vmem:[#allocation21_spill] sm:$0xff]  ;;  %v2959_v40 = vld [vmem:[#allocation22_spill] sm:$0xff] }
 0x331   :  { %1063 = vmatpush.msrb.mxu2 %v2143_v53  ;;  %1083 = vmatpush.msrb.mxu3 %v2149_v54  ;;  %v2960_v53 = vld [vmem:[#allocation23_spill] sm:$0xff]  ;;  %v2961_v54 = vld [vmem:[#allocation24_spill] sm:$0xff] }
 0x332   :  { %1024 = vmatpush.msrb.mxu0 %v2155_v61  ;;  %1044 = vmatpush.msrb.mxu1 %v2161_v62  ;;  %v2962_v61 = vld [vmem:[#allocation29_spill] sm:$0xff]  ;;  %v2963_v62 = vld [vmem:[#allocation30_spill] sm:$0xff] }
 0x333   :  { %1064 = vmatpush.msrb.mxu2 %v2167_v51  ;;  %1084 = vmatpush.msrb.mxu3 %v2173_v56  ;;  %v2964_v51 = vld [vmem:[#allocation3_spill] sm:$0xff]  ;;  %v2965_v56 = vld [vmem:[#allocation4_spill] sm:$0xff] }
 0x334   :  { %1025 = vmatpush.msrb.mxu0 %v2179_v49  ;;  %1045 = vmatpush.msrb.mxu1 %v2185_v63  ;;  %v2966_v49 = vld [vmem:[#allocation5_spill] sm:$0xff]  ;;  %v2967_v63 = vld [vmem:[#allocation6_spill] sm:$0xff] }
 0x335   :  { %1065 = vmatpush.msrb.mxu2 %v2191_v52  ;;  %1085 = vmatpush.msrb.mxu3 %v2197_v58  ;;  %v2968_v52 = vld [vmem:[#allocation7_spill] sm:$0xff]  ;;  %v2969_v58 = vld [vmem:[#allocation8_spill] sm:$0xff] }
 0x336   :  { %1026 = vmatpush.msrb.mxu0 %v2203_v48  ;;  %1046 = vmatpush.msrb.mxu1 %v2209_v43  ;;  %v2970_v48 = vld [vmem:[#allocation9_spill] sm:$0xff]  ;;  %v2971_v43 = vld [vmem:[#allocation10_spill] sm:$0xff] }
 0x337   :  { %1066 = vmatpush.msrb.mxu2 %v2215_v50  ;;  %1086 = vmatpush.msrb.mxu3 %v2221_v45  ;;  %v60_v50 = vpop.permute.xlu2 %59  ;;  %v2972_v45 = vld [vmem:[#allocation25_spill] sm:$0xff] }
 0x338   :  { %1027 = vmatpush.msrb.mxu0 %v2227_v44  ;;  %1047 = vmatpush.msrb.mxu1 %v2233_v59  ;;  %v101_v44 = vmul.f32 %v2972_v45, %v60_v50  ;;  %v2973_v59 = vld [vmem:[#allocation26_spill] sm:$0xff] }
 0x339   :  { %1067 = vmatpush.msrb.mxu2 %v2239_v55  ;;  %1087 = vmatpush.msrb.mxu3 %v2917_v3  ;;  %v102_v55 = vmul.f32 %v2973_v59, %v60_v50 }
 0x33a   :  { %1028 = vmatpush.msrb.mxu0 %v2918_v12  ;;  %1048 = vmatpush.msrb.mxu1 %v2919_v13 }
 0x33b   :  { %1068 = vmatpush.msrb.mxu2 %v2920_v14  ;;  %1088 = vmatpush.msrb.mxu3 %v2921_v15  ;;  %v103_v14 = vmul.f32 %v2905_v35, %v60_v50  ;;  %v104_v15 = vmul.f32 %v2906_v37, %v60_v50 }
 0x33c   :  { %1029 = vmatpush.msrb.mxu0 %v2922_v16  ;;  %1049 = vmatpush.msrb.mxu1 %v2923_v17 }
 0x33d   :  { %1069 = vmatpush.msrb.mxu2 %v2924_v18  ;;  %1089 = vmatpush.msrb.mxu3 %v2925_v19  ;;  %v2976_v18 = vld [vmem:[#allocation31_spill] sm:$0xff] }
 0x33e   :  { %1030 = vmatpush.msrb.mxu0 %v2299_v25  ;;  %1050 = vmatpush.msrb.mxu1 %v2305_v27  ;;  %v2975_v27 = vld [vmem:[#allocation28_spill] sm:$0xff]  ;;  %v145_v19 = vadd.f32 %v2976_v18, %v103_v14 }
 0x33f   :  { %1070 = vmatpush.msrb.mxu2 %v2311_v28  ;;  %1090 = vmatpush.msrb.mxu3 %v2317_v23  ;;  %v2974_v23 = vld [vmem:[#allocation27_spill] sm:$0xff]  ;;  %v144_v28 = vadd.f32 %v2975_v27, %v102_v55 }
 0x340   :  { %1031 = vmatpush.msrb.mxu0 %v2405_v20  ;;  %1051 = vmatpush.msrb.mxu1 %v2949_v29  ;;  %v143_v25 = vadd.f32 %v2974_v23, %v101_v44  ;;  %v146_v20 = vadd.f32 %v1912_v46, %v104_v15 }
 0x341   :  { %1071 = vmatpush.msrb.mxu2 %v2950_v30  ;;  %1091 = vmatpush.msrb.mxu3 %v2951_v47 }
 0x342   :  { %1032 = vmatpush.msrb.mxu0 %v2952_v31  ;;  %1052 = vmatpush.msrb.mxu1 %v2953_v32  ;;  %v65_v31 = vpop.permute.xlu0 %64 }
 0x343   :  { %1072 = vmatpush.msrb.mxu2 %v2954_v33  ;;  %1092 = vmatpush.msrb.mxu3 %v2955_v34  ;;  %v105_v32 = vmul.f32 %v2972_v45, %v65_v31  ;;  %v106_v33 = vmul.f32 %v2973_v59, %v65_v31 }
 0x344   :  { %1033 = vmatpush.msrb.mxu0 %v2956_v36  ;;  %1053 = vmatpush.msrb.mxu1 %v2957_v38  ;;  %v1138_v36 = vld [vmem:[%s2709_s4 + $0x78] sm:$0xff] }
 0x345   :  { %1073 = vmatpush.msrb.mxu2 %v2958_v39  ;;  %1093 = vmatpush.msrb.mxu3 %v2959_v40  ;;  %v147_v34 = vadd.f32 %v2974_v23, %v105_v32 }
 0x346   :  { %1034 = vmatpush.msrb.mxu0 %v2960_v53  ;;  %1054 = vmatpush.msrb.mxu1 %v2961_v54  ;;  %v107_v54 = vmul.f32 %v2905_v35, %v65_v31 }
 0x347   :  { %1074 = vmatpush.msrb.mxu2 %v2962_v61  ;;  %1094 = vmatpush.msrb.mxu3 %v2963_v62  ;;  %v108_v61 = vmul.f32 %v2906_v37, %v65_v31 }
 0x348   :  { %1035 = vmatpush.msrb.mxu0 %v2964_v51  ;;  %1055 = vmatpush.msrb.mxu1 %v2965_v56  ;;  %v149_v56 = vadd.f32 %v2976_v18, %v107_v54 }
 0x349   :  { %1075 = vmatpush.msrb.mxu2 %v2966_v49  ;;  %1095 = vmatpush.msrb.mxu3 %v2967_v63  ;;  %v150_v49 = vadd.f32 %v1912_v46, %v108_v61 }
 0x34a   :  { %1036 = vmatpush.msrb.mxu0 %v2968_v52  ;;  %1056 = vmatpush.msrb.mxu1 %v2969_v58 }
 0x34b   :  { %1076 = vmatpush.msrb.mxu2 %v2970_v48  ;;  %1096 = vmatpush.msrb.mxu3 %v2971_v43 }
 0x3a7   :  { %v820_v7 = vpop.f32.mrf.mxu0  ;;  %v840_v3 = vpop.f32.mrf.mxu1 }
 0x3a8   :  { %v883_v12 = vadd.f32 %v820_v7, %v143_v25  ;;  %v884_v13 = vadd.f32 %v840_v3, %v144_v28 }
 0x3aa   :  { %v887_v16 = vmul.f32 0.5, %v883_v12  ;;  %v891_v17 = vmul.f32 0.5, %v884_v13 }
 0x3ac   :  { %1231 = vtanh.f32 %v887_v16 }
 0x3ad   :  { %1233 = vtanh.f32 %v891_v17 }
 0x3ae   :  { %v860_v8 = vpop.f32.mrf.mxu2  ;;  %v880_v6 = vpop.f32.mrf.mxu3 }
 0x3af   :  { %v885_v5 = vadd.f32 %v860_v8, %v145_v19  ;;  %v886_v2 = vadd.f32 %v880_v6, %v146_v20  ;;  %v1137_v8 = vld [vmem:[%s2709_s4 + $0x70] sm:$0xff]  ;;  %v1136_v6 = vld [vmem:[%s2709_s4 + $0x68] sm:$0xff] }
 0x3b1   :  { %1235 = vtanh.f32 %v885_v5  ;;  %v896_v1 = vmul.f32 0.5, %v886_v2  ;;  %v1135_v5 = vld [vmem:[%s2709_s4 + $0x60] sm:$0xff]  ;;  %v1134_v2 = vld [vmem:[%s2709_s4 + $0x58] sm:$0xff] }
 0x3b2   :  { %v1232_v4 = vpop.eup %1231 }
 0x3b3   :  { %v1234_v10 = vpop.eup %1233  ;;  %v889_v9 = vmul.f32 0.5, %v1232_v4  ;;  %1237 = vtanh.f32 %v896_v1  ;;  %v1133_v1 = vld [vmem:[%s2709_s4 + $0x50] sm:$0xff]  ;;  %v1132_v4 = vld [vmem:[%s2709_s4 + $0x48] sm:$0xff] }
 0x3b4   :  { %v893_v0 = vmul.f32 0.5, %v1234_v10  ;;  %v1131_v10 = vld [vmem:[%s2709_s4 + $0x40] sm:$0xff] }
 0x3b5   :  { %v890_v11 = vadd.f32 0.5, %v889_v9  ;;  %v1130_v9 = vld [vmem:[%s2709_s4 + $0x38] sm:$0xff] }
 0x3b6   :  { %v894_v21 = vadd.f32 0.5, %v893_v0  ;;  %v1129_v0 = vld [vmem:[%s2709_s4 + $0x30] sm:$0xff] }
 0x3b7   :  { %v1236_v22 = vpop.eup %1235 }
 0x3b8   :  { %v900_v42 = vmul.f32 %v894_v21, %v2555_v57  ;;  %v901_v24 = vmul.f32 %v1236_v22, %v890_v11  ;;  %v148_v57 = vadd.f32 %v2975_v27, %v106_v33  ;;  %v1128_v11 = vld [vmem:[%s2709_s4 + $0x28] sm:$0xff]  ;;  %v1127_v21 = vld [vmem:[%s2709_s4 + $0x20] sm:$0xff]  ;;  %v1126_v22 = vld [vmem:[%s2709_s4 + $0x18] sm:$0xff] }
 0x3b9   :  { %v1238_v26 = vpop.eup %1237 }
 0x3ba   :  { %v902_v60 = vadd.f32 %v901_v24, %v900_v42  ;;  %v898_v41 = vmul.f32 0.5, %v1238_v26  ;;  %v70_v42 = vpop.permute.xlu1 %69  ;;  %v1125_v24 = vld [vmem:[%s2709_s4 + $0x10] sm:$0xff]  ;;  %v1124_v26 = vld [vmem:[%s2709_s4 + $0x8] sm:$0xff] }
 0x3bc   :  { %1239 = vtanh.f32 %v902_v60  ;;  %v899_v29 = vadd.f32 0.5, %v898_v41  ;;  %v110_v41 = vmul.f32 %v2973_v59, %v70_v42 }
 0x3c2   :  { %v1240_v30 = vpop.eup %1239 }
 0x3c3   :  { %v904_v47 = vmul.f32 %v1240_v30, %v899_v29  ;;  %v1123_v29 = vld [vmem:[%s2709_s4] sm:$0xff] }
 0x3c5   :  { %928 = vmatmul.f32.vlgmr.msra.gmra.mxu0 %v904_v47  ;;  %948 = vmatmul.f32.vlgmr.msra.gmra.mxu1 %v904_v47 }
 0x3c6   :  { %968 = vmatmul.f32.vlgmr.msra.gmra.mxu2 %v904_v47  ;;  %988 = vmatmul.f32.vlgmr.msra.gmra.mxu3 %v904_v47  ;;  %v152_v47 = vadd.f32 %v2975_v27, %v110_v41 }
 0x3c7   :  { %1143 = vmatpush.msra.mxu0 %v1138_v36 }
 0x3c9   :  { %1144 = vmatpush.msra.mxu0 %v1137_v8 }
 0x3cb   :  { %1145 = vmatpush.msra.mxu0 %v1136_v6 }
 0x3cd   :  { %1146 = vmatpush.msra.mxu0 %v1135_v5 }
 0x3cf   :  { %1147 = vmatpush.msra.mxu0 %v1134_v2 }
 0x3d1   :  { %1148 = vmatpush.msra.mxu0 %v1133_v1 }
 0x3d3   :  { %1149 = vmatpush.msra.mxu0 %v1132_v4 }
 0x3d5   :  { %1150 = vmatpush.msra.mxu0 %v1131_v10 }
 0x3d7   :  { %1151 = vmatpush.msra.mxu0 %v1130_v9 }
 0x3d9   :  { %1152 = vmatpush.msra.mxu0 %v1129_v0 }
 0x3db   :  { %1153 = vmatpush.msra.mxu0 %v1128_v11 }
 0x3dd   :  { %1154 = vmatpush.msra.mxu0 %v1127_v21 }
 0x3df   :  { %1155 = vmatpush.msra.mxu0 %v1126_v22 }
 0x3e1   :  { %1156 = vmatpush.msra.mxu0 %v1125_v24 }
 0x3e3   :  { %1157 = vmatpush.msra.mxu0 %v1124_v26 }
 0x3e5   :  { %1158 = vmatpush.msra.mxu0 %v1123_v29 }
 0x442   :  { %v929_v38 = vpop.f32.mrf.mxu0  ;;  %v949_v39 = vpop.f32.mrf.mxu1 }
 0x443   :  { %v992_v40 = vadd.f32 %v929_v38, %v147_v34  ;;  %v993_v53 = vadd.f32 %v949_v39, %v148_v57  ;;  %v111_v57 = vmul.f32 %v2905_v35, %v70_v42 }
 0x445   :  { %v996_v62 = vmul.f32 0.5, %v992_v40  ;;  %v1000_v51 = vmul.f32 0.5, %v993_v53  ;;  %v153_v38 = vadd.f32 %v2976_v18, %v111_v57 }
 0x447   :  { %1241 = vtanh.f32 %v996_v62 }
 0x448   :  { %1243 = vtanh.f32 %v1000_v51 }
 0x449   :  { %v969_v63 = vpop.f32.mrf.mxu2  ;;  %v989_v52 = vpop.f32.mrf.mxu3 }
 0x44a   :  { %v994_v58 = vadd.f32 %v969_v63, %v149_v56  ;;  %v995_v48 = vadd.f32 %v989_v52, %v150_v49 }
 0x44c   :  { %1245 = vtanh.f32 %v994_v58  ;;  %v1005_v43 = vmul.f32 0.5, %v995_v48 }
 0x44d   :  { %v1242_v50 = vpop.eup %1241 }
 0x44e   :  { %v1244_v44 = vpop.eup %1243  ;;  %v998_v55 = vmul.f32 0.5, %v1242_v50  ;;  %1247 = vtanh.f32 %v1005_v43 }
 0x44f   :  { %v1002_v25 = vmul.f32 0.5, %v1244_v44  ;;  %v1180_v44 = vld [vmem:[%s2710_s5] ss:$0 sm:$0xff] }
 0x450   :  { %v999_v28 = vadd.f32 0.5, %v998_v55 }
 0x451   :  { %v1003_v7 = vadd.f32 0.5, %v1002_v25 }
 0x452   :  { %v1246_v3 = vpop.eup %1245 }
 0x453   :  { %v1009_v12 = vmul.f32 %v1003_v7, %v902_v60  ;;  %v1010_v13 = vmul.f32 %v1246_v3, %v999_v28  ;;  %v109_v60 = vmul.f32 %v2972_v45, %v70_v42  ;;  %v112_v45 = vmul.f32 %v2906_v37, %v70_v42 }
 0x454   :  { %v1248_v14 = vpop.eup %1247 }
 0x455   :  { %v2642_v15 = vadd.f32 %v1010_v13, %v1009_v12  ;;  %v1007_v16 = vmul.f32 0.5, %v1248_v14  ;;  %v151_v30 = vadd.f32 %v2974_v23, %v109_v60  ;;  %v154_v39 = vadd.f32 %v1912_v46, %v112_v45 }
 0x457   :  { %1249 = vtanh.f32 %v2642_v15  ;;  %v1008_v17 = vadd.f32 0.5, %v1007_v16 }
 0x45d   :  { %v1250_v19 = vpop.eup %1249 }
 0x45e   :  { %v1013_v20 = vmul.f32 %v1250_v19, %v1008_v17 }
 0x460   :  { %1037 = vmatmul.f32.vlgmr.msrb.gmra.mxu0 %v1013_v20  ;;  %1057 = vmatmul.f32.vlgmr.msrb.gmra.mxu1 %v1013_v20 }
 0x461   :  { %1077 = vmatmul.f32.vlgmr.msrb.gmra.mxu2 %v1013_v20  ;;  %1097 = vmatmul.f32.vlgmr.msrb.gmra.mxu3 %v1013_v20 }
 0x4dd   :  { %v1038_v31 = vpop.f32.mrf.mxu0  ;;  %v1058_v32 = vpop.f32.mrf.mxu1 }
 0x4de   :  { %v1101_v33 = vadd.f32 %v1038_v31, %v151_v30  ;;  %v1102_v34 = vadd.f32 %v1058_v32, %v152_v47 }
 0x4e0   :  { %v1105_v36 = vmul.f32 0.5, %v1101_v33  ;;  %v1109_v59 = vmul.f32 0.5, %v1102_v34 }
 0x4e2   :  { %1251 = vtanh.f32 %v1105_v36 }
 0x4e3   :  { %1253 = vtanh.f32 %v1109_v59 }
 0x4e4   :  { %v1078_v40 = vpop.f32.mrf.mxu2  ;;  %v1098_v23 = vpop.f32.mrf.mxu3 }
 0x4e5   :  { %v1103_v53 = vadd.f32 %v1078_v40, %v153_v38  ;;  %v1104_v27 = vadd.f32 %v1098_v23, %v154_v39 }
 0x4e7   :  { %1255 = vtanh.f32 %v1103_v53  ;;  %v1114_v54 = vmul.f32 0.5, %v1104_v27 }
 0x4e8   :  { %v1252_v61 = vpop.eup %1251 }
 0x4e9   :  { %v1254_v62 = vpop.eup %1253  ;;  %v1107_v51 = vmul.f32 0.5, %v1252_v61  ;;  %1257 = vtanh.f32 %v1114_v54 }
 0x4ea   :  { %v1111_v35 = vmul.f32 0.5, %v1254_v62 }
 0x4eb   :  { %v1108_v37 = vadd.f32 0.5, %v1107_v51 }
 0x4ec   :  { %v1112_v56 = vadd.f32 0.5, %v1111_v35 }
 0x4ed   :  { %v1256_v49 = vpop.eup %1255 }
 0x4ee   :  { %v1118_v63 = vmul.f32 %v1112_v56, %v2642_v15  ;;  %v1119_v52 = vmul.f32 %v1256_v49, %v1108_v37 }
 0x4ef   :  { %v1258_v18 = vpop.eup %1257 }
 0x4f0   :  { %v1120_v58 = vadd.f32 %v1119_v52, %v1118_v63  ;;  %v1116_v46 = vmul.f32 0.5, %v1258_v18 }
 0x4f2   :  { %1259 = vtanh.f32 %v1120_v58  ;;  %v1117_v48 = vadd.f32 0.5, %v1116_v46 }
 0x4f8   :  { %v1260_v43 = vpop.eup %1259 }
 0x4f9   :  { %v1122_v50 = vmul.f32 %v1260_v43, %v1117_v48 }
 0x4fb   :  { %1159 = vmatmul.f32.vlgmr.msra.gmra.mxu0 %v1122_v50 }
 0x578   :  { %v1160_v55 = vpop.f32.mrf.mxu0 }
 0x579   :  { %v1161_v25 = vadd.f32 %v1180_v44, %v1160_v55 }
 0x57b   :  { %1163 = vst [vmem:[%s2711_s6] sm:$0xff] %v1161_v25 }

</bundles_post_ra>
